<compile_context>
chip_gen: v6e
topology: v6e:2x2x1
jax: 0.10.0
libtpu: 0.0.40
codegen_flags: <defaults>
</compile_context>

<pallas_src>
import jax
import jax.numpy as jnp
from jax.experimental import pallas as pl
from jax.experimental.pallas import tpu as pltpu


def _round_up(x, m):
    return ((x + m - 1) // m) * m


def _leaky_relu(x, slope=0.2):
    return jnp.where(x >= 0, x, slope * x)


def discriminator_kernel(x_ref, w1_ref, b1_ref, w2_ref, b2_ref, w3_ref, b3_ref,
                         o_ref):
    # x_ref: (TB, 784) bf16   w1: (784,256) bf16   w2: (256,256) bf16
    # w3: (1,256) bf16 (row)  b1/b2: (1,256) f32   b3: (1,1) f32
    # o_ref: (1, 1, TB) f32 lane-dense slab of probabilities for this tile.
    x = x_ref[...]

    # Layer 1: Linear(784, 256) + LeakyReLU(0.2).  bf16 MXU, f32 accumulate.
    h1 = jnp.dot(x, w1_ref[...], preferred_element_type=jnp.float32)
    h1 = _leaky_relu(h1 + b1_ref[...])                       # f32 (TB, 256)

    # Layer 2: Linear(256, 256) + LeakyReLU(0.2).
    h2 = jnp.dot(h1.astype(jnp.bfloat16), w2_ref[...],
                 preferred_element_type=jnp.float32)
    h2 = _leaky_relu(h2 + b2_ref[...])                       # f32 (TB, 256)

    # Layer 3: Linear(256, 1).  Computed as (1,256) x (TB,256)^T -> (1, TB) so
    # the result is already lane-dense (no N=1 MXU pass, no (TB,1) masked store).
    logits = jax.lax.dot_general(
        w3_ref[...], h2.astype(jnp.bfloat16),
        dimension_numbers=(((1,), (1,)), ((), ())),
        preferred_element_type=jnp.float32)                  # (1, TB)
    logits = logits + b3_ref[...]                            # (1,1) broadcast

    # Sigmoid: exp on the EUP; reciprocal kept exact so the result matches the
    # reference tightly (flip approx=True to push the divide onto the EUP too).
    probs = pl.reciprocal(1.0 + jnp.exp(-logits), approx=False)
    o_ref[0] = probs                                         # (1, TB) store


def discriminator_forward(x, params, block_b=256):
    """x: (B, 784) float32. Returns (B, 1) float32 in [0, 1]."""
    w1, b1, w2, b2, w3, b3 = params
    B, F = x.shape

    # Batch tile: multiple of 128 (lane-dense output), capped at block_b.
    TB = max(128, min(block_b, _round_up(B, 128)))
    Bp = _round_up(B, TB)
    num_tiles = Bp // TB

    # bf16 MXU operands; pad the batch so every tile is full.
    xb = x.astype(jnp.bfloat16)
    if Bp != B:
        xb = jnp.pad(xb, ((0, Bp - B), (0, 0)))
    w1b = w1.astype(jnp.bfloat16)
    w2b = w2.astype(jnp.bfloat16)
    w3b = w3.astype(jnp.bfloat16)

    flops = 2 * Bp * (784 * 256 + 256 * 256 + 256)
    bytes_accessed = (xb.size * 2 + w1b.size * 2 + w2b.size * 2 + w3b.size * 2
                      + b1.size * 4 + b2.size * 4 + b3.size * 4 + Bp * 4)
    cost = pl.CostEstimate(flops=flops, transcendentals=Bp,
                           bytes_accessed=bytes_accessed)

    out = pl.pallas_call(
        discriminator_kernel,
        out_shape=jax.ShapeDtypeStruct((num_tiles, 1, TB), jnp.float32),
        grid=(num_tiles,),
        in_specs=[
            pl.BlockSpec((TB, F), lambda i: (i, 0)),        # x tile (streamed)
            pl.BlockSpec((F, 256), lambda i: (0, 0)),       # w1 (resident)
            pl.BlockSpec((1, 256), lambda i: (0, 0)),       # b1
            pl.BlockSpec((256, 256), lambda i: (0, 0)),     # w2
            pl.BlockSpec((1, 256), lambda i: (0, 0)),       # b2
            pl.BlockSpec((1, 256), lambda i: (0, 0)),       # w3 (row)
            pl.BlockSpec((1, 1), lambda i: (0, 0)),         # b3
        ],
        out_specs=pl.BlockSpec((1, 1, TB), lambda i: (i, 0, 0)),
        compiler_params=pltpu.CompilerParams(
            dimension_semantics=("parallel",)),
        cost_estimate=cost,
    )(xb, w1b, b1, w2b, b2, w3b, b3)

    # Lane-dense slab -> (B, 1); pure wrapper-side layout plumbing.
    return out.reshape(Bp, 1)[:B]


def init_params(key):
    """Deterministic init mirroring PyTorch nn.Linear default (uniform
    +/- 1/sqrt(fan_in)).  w1/w2 are (in, out); w3 is a (1, 256) row; biases
    are (1, out) / (1, 1)."""
    ks = jax.random.split(key, 6)

    def linear(kw, kb, fan_in, fan_out, w_shape, b_shape):
        bound = 1.0 / jnp.sqrt(fan_in)
        w = jax.random.uniform(kw, w_shape, jnp.float32, -bound, bound)
        b = jax.random.uniform(kb, b_shape, jnp.float32, -bound, bound)
        return w, b

    w1, b1 = linear(ks[0], ks[1], 784, 256, (784, 256), (1, 256))
    w2, b2 = linear(ks[2], ks[3], 256, 256, (256, 256), (1, 256))
    w3, b3 = linear(ks[4], ks[5], 256, 1, (1, 256), (1, 1))
    return (w1, b1, w2, b2, w3, b3)


def reference_forward(x, params, emulate_bf16=False):
    """Plain-JAX reference (mirrors the PyTorch forward).  With
    emulate_bf16=True it applies the same bf16-operand / f32-accumulate casts
    as the kernel, for a tight numerical comparison."""
    w1, b1, w2, b2, w3, b3 = params
    cast = (lambda a: a.astype(jnp.bfloat16)) if emulate_bf16 else (lambda a: a)
    h = jnp.dot(cast(x), cast(w1), preferred_element_type=jnp.float32) + b1
    h = jnp.where(h >= 0, h, 0.2 * h)
    h = jnp.dot(cast(h), cast(w2), preferred_element_type=jnp.float32) + b2
    h = jnp.where(h >= 0, h, 0.2 * h)
    logits = jnp.dot(cast(h), cast(w3).T,
                     preferred_element_type=jnp.float32) + b3
    return jax.nn.sigmoid(logits)


if __name__ == "__main__":
    key = jax.random.PRNGKey(0)
    k_param, k_x = jax.random.split(key)

    params = init_params(k_param)
    B = 8  # small demo batch; any B works (tiled + padded internally)
    x = jax.random.normal(k_x, (B, 784), dtype=jnp.float32)

    out = jax.block_until_ready(discriminator_forward(x, params))
    assert out.shape == (B, 1)

    ref_bf16 = reference_forward(x, params, emulate_bf16=True)
    ref_f32 = reference_forward(x, params, emulate_bf16=False)
    assert jnp.allclose(out, ref_bf16, atol=1e-3, rtol=1e-3), \
        "mismatch vs bf16-emulating reference"
    assert jnp.allclose(out, ref_f32, atol=3e-2, rtol=3e-2), \
        "mismatch vs f32 reference"

    print("KERNEL_OK")
</pallas_src>

<mosaic_0001>
module attributes {stable_mosaic.version = 11 : i64} {
  func.func @discriminator_kernel(%arg0: i32, %arg1: memref<128x784xbf16, #tpu.memory_space<vmem>>, %arg2: memref<784x256xbf16, #tpu.memory_space<vmem>>, %arg3: memref<1x256xf32, #tpu.memory_space<vmem>>, %arg4: memref<256x256xbf16, #tpu.memory_space<vmem>>, %arg5: memref<1x256xf32, #tpu.memory_space<vmem>>, %arg6: memref<1x256xbf16, #tpu.memory_space<vmem>>, %arg7: memref<1x1xf32, #tpu.memory_space<vmem>>, %arg8: memref<1x1x128xf32, #tpu.memory_space<vmem>>) attributes {dimension_semantics = [#tpu.dimension_semantics<parallel>], iteration_bounds = array<i64: 1>, scalar_prefetch = 0 : i64, scratch_operands = 0 : i64, tpu.core_type = #tpu.core_type<tc>, window_params = [{transform_indices = @transform_0, window_bounds = array<i64: 128, 784>}, {pipeline_mode = #tpu.pipeline_mode<synchronous>, transform_indices = @transform_1, window_bounds = array<i64: 784, 256>}, {pipeline_mode = #tpu.pipeline_mode<synchronous>, transform_indices = @transform_2, window_bounds = array<i64: 1, 256>}, {pipeline_mode = #tpu.pipeline_mode<synchronous>, transform_indices = @transform_3, window_bounds = array<i64: 256, 256>}, {pipeline_mode = #tpu.pipeline_mode<synchronous>, transform_indices = @transform_4, window_bounds = array<i64: 1, 256>}, {pipeline_mode = #tpu.pipeline_mode<synchronous>, transform_indices = @transform_5, window_bounds = array<i64: 1, 256>}, {pipeline_mode = #tpu.pipeline_mode<synchronous>, transform_indices = @transform_6, window_bounds = array<i64: 1, 1>}, {transform_indices = @transform_7, window_bounds = array<i64: 1, 1, 128>}]} {
    %c0 = arith.constant 0 : index
    %c0_0 = arith.constant 0 : index
    %0 = vector.load %arg1[%c0, %c0_0] : memref<128x784xbf16, #tpu.memory_space<vmem>>, vector<128x784xbf16>
    %c0_1 = arith.constant 0 : index
    %c0_2 = arith.constant 0 : index
    %1 = vector.load %arg2[%c0_1, %c0_2] : memref<784x256xbf16, #tpu.memory_space<vmem>>, vector<784x256xbf16>
    %cst = arith.constant dense<0.000000e+00> : vector<128x256xf32>
    %2 = tpu.matmul %0, %1, %cst {dimension_numbers = #tpu.dot_dimension_numbers<[1], [0], [0], [1], [0, 0, 1, 1], [], []>} : vector<128x784xbf16>, vector<784x256xbf16>, vector<128x256xf32> -> vector<128x256xf32>
    %c0_3 = arith.constant 0 : index
    %c0_4 = arith.constant 0 : index
    %3 = vector.load %arg3[%c0_3, %c0_4] : memref<1x256xf32, #tpu.memory_space<vmem>>, vector<1x256xf32>
    %4 = vector.broadcast %3 : vector<1x256xf32> to vector<128x256xf32>
    %5 = arith.addf %2, %4 : vector<128x256xf32>
    %cst_5 = arith.constant 0.000000e+00 : f32
    %6 = vector.broadcast %cst_5 : f32 to vector<128x256xf32>
    %7 = arith.cmpf oge, %5, %6 : vector<128x256xf32>
    %cst_6 = arith.constant 2.000000e-01 : f32
    %8 = vector.broadcast %cst_6 : f32 to vector<128x256xf32>
    %9 = arith.mulf %8, %5 : vector<128x256xf32>
    %10 = arith.select %7, %5, %9 : vector<128x256xi1>, vector<128x256xf32>
    %11 = arith.truncf %10 : vector<128x256xf32> to vector<128x256xbf16>
    %c0_7 = arith.constant 0 : index
    %c0_8 = arith.constant 0 : index
    %12 = vector.load %arg4[%c0_7, %c0_8] : memref<256x256xbf16, #tpu.memory_space<vmem>>, vector<256x256xbf16>
    %cst_9 = arith.constant dense<0.000000e+00> : vector<128x256xf32>
    %13 = tpu.matmul %11, %12, %cst_9 {dimension_numbers = #tpu.dot_dimension_numbers<[1], [0], [0], [1], [0, 0, 1, 1], [], []>} : vector<128x256xbf16>, vector<256x256xbf16>, vector<128x256xf32> -> vector<128x256xf32>
    %c0_10 = arith.constant 0 : index
    %c0_11 = arith.constant 0 : index
    %14 = vector.load %arg5[%c0_10, %c0_11] : memref<1x256xf32, #tpu.memory_space<vmem>>, vector<1x256xf32>
    %15 = vector.broadcast %14 : vector<1x256xf32> to vector<128x256xf32>
    %16 = arith.addf %13, %15 : vector<128x256xf32>
    %cst_12 = arith.constant 0.000000e+00 : f32
    %17 = vector.broadcast %cst_12 : f32 to vector<128x256xf32>
    %18 = arith.cmpf oge, %16, %17 : vector<128x256xf32>
    %cst_13 = arith.constant 2.000000e-01 : f32
    %19 = vector.broadcast %cst_13 : f32 to vector<128x256xf32>
    %20 = arith.mulf %19, %16 : vector<128x256xf32>
    %21 = arith.select %18, %16, %20 : vector<128x256xi1>, vector<128x256xf32>
    %c0_14 = arith.constant 0 : index
    %c0_15 = arith.constant 0 : index
    %22 = vector.load %arg6[%c0_14, %c0_15] : memref<1x256xbf16, #tpu.memory_space<vmem>>, vector<1x256xbf16>
    %23 = arith.truncf %21 : vector<128x256xf32> to vector<128x256xbf16>
    %cst_16 = arith.constant dense<0.000000e+00> : vector<1x128xf32>
    %24 = tpu.matmul %22, %23, %cst_16 {dimension_numbers = #tpu.dot_dimension_numbers<[1], [1], [0], [0], [0, 0, 1, 0], [], []>} : vector<1x256xbf16>, vector<128x256xbf16>, vector<1x128xf32> -> vector<1x128xf32>
    %c0_17 = arith.constant 0 : index
    %c0_18 = arith.constant 0 : index
    %25 = vector.load %arg7[%c0_17, %c0_18] : memref<1x1xf32, #tpu.memory_space<vmem>>, vector<1x1xf32>
    %26 = vector.broadcast %25 : vector<1x1xf32> to vector<1x128xf32>
    %27 = arith.addf %24, %26 : vector<1x128xf32>
    %cst_19 = arith.constant 0.000000e+00 : f32
    %28 = vector.broadcast %cst_19 : f32 to vector<1x128xf32>
    %29 = arith.subf %28, %27 : vector<1x128xf32>
    %30 = math.exp %29 : vector<1x128xf32>
    %cst_20 = arith.constant 1.000000e+00 : f32
    %31 = vector.broadcast %cst_20 : f32 to vector<1x128xf32>
    %32 = arith.addf %31, %30 : vector<1x128xf32>
    %33 = tpu.reciprocal %32 : vector<1x128xf32> -> vector<1x128xf32>
    %c0_21 = arith.constant 0 : index
    %c0_22 = arith.constant 0 : index
    %c0_23 = arith.constant 0 : index
    %34 = vector.load %arg8[%c0_21, %c0_22, %c0_23] : memref<1x1x128xf32, #tpu.memory_space<vmem>>, vector<1x1x128xf32>
    %35 = vector.shape_cast %34 : vector<1x1x128xf32> to vector<1x128xf32>
    %36 = vector.shape_cast %33 : vector<1x128xf32> to vector<1x1x128xf32>
    tpu.vector_store %arg8[%c0_21, %c0_22, %c0_23], %36 {strides = array<i32>} : memref<1x1x128xf32, #tpu.memory_space<vmem>>, vector<1x1x128xf32>,
    return
  }
  func.func @transform_0(%arg0: i32) -> (i32, i32) {
    %c0_i32 = arith.constant 0 : i32
    %c0_i32_0 = arith.constant 0 : i32
    return %arg0, %c0_i32 : i32, i32
  }
  func.func @transform_1(%arg0: i32) -> (i32, i32) {
    %c0_i32 = arith.constant 0 : i32
    %c0_i32_0 = arith.constant 0 : i32
    %c0_i32_1 = arith.constant 0 : i32
    return %c0_i32, %c0_i32_0 : i32, i32
  }
  func.func @transform_2(%arg0: i32) -> (i32, i32) {
    %c0_i32 = arith.constant 0 : i32
    %c0_i32_0 = arith.constant 0 : i32
    %c0_i32_1 = arith.constant 0 : i32
    return %c0_i32, %c0_i32_0 : i32, i32
  }
  func.func @transform_3(%arg0: i32) -> (i32, i32) {
    %c0_i32 = arith.constant 0 : i32
    %c0_i32_0 = arith.constant 0 : i32
    %c0_i32_1 = arith.constant 0 : i32
    return %c0_i32, %c0_i32_0 : i32, i32
  }
  func.func @transform_4(%arg0: i32) -> (i32, i32) {
    %c0_i32 = arith.constant 0 : i32
    %c0_i32_0 = arith.constant 0 : i32
    %c0_i32_1 = arith.constant 0 : i32
    return %c0_i32, %c0_i32_0 : i32, i32
  }
  func.func @transform_5(%arg0: i32) -> (i32, i32) {
    %c0_i32 = arith.constant 0 : i32
    %c0_i32_0 = arith.constant 0 : i32
    %c0_i32_1 = arith.constant 0 : i32
    return %c0_i32, %c0_i32_0 : i32, i32
  }
  func.func @transform_6(%arg0: i32) -> (i32, i32) {
    %c0_i32 = arith.constant 0 : i32
    %c0_i32_0 = arith.constant 0 : i32
    %c0_i32_1 = arith.constant 0 : i32
    return %c0_i32, %c0_i32_0 : i32, i32
  }
  func.func @transform_7(%arg0: i32) -> (i32, i32, i32) {
    %c0_i32 = arith.constant 0 : i32
    %c0_i32_0 = arith.constant 0 : i32
    %c0_i32_1 = arith.constant 0 : i32
    return %arg0, %c0_i32, %c0_i32_0 : i32, i32, i32
  }
}

</mosaic_0001>

<bundles_post_ra>
// kernel: tpu_custom_call.1
= control target key start
LH: loop header
LB: loop body
LE: loop exit
PB: predicated region body
PF: predicated region fallthrough
CT: control target
= control target key end

     0   :  { %s3480_s0 = inlined_call_operand.vmem [shape: bf16[128,784], index: 0, kind: input, shape index: {}]   ;;  %s3481_s1 = inlined_call_operand.vmem [shape: bf16[784,256], index: 1, kind: input, shape index: {}]   ;;  %s3482_s2 = inlined_call_operand.vmem [shape: f32[1,256], index: 2, kind: input, shape index: {}]   ;;  %s3483_s3 = inlined_call_operand.hbm [shape: bf16[256,256], index: 3, kind: input, shape index: {}]   ;;  %s3484_s4 = inlined_call_operand.vmem [shape: f32[1,256], index: 4, kind: input, shape index: {}]   ;;  %s3485_s5 = inlined_call_operand.vmem [shape: bf16[1,256], index: 5, kind: input, shape index: {}]   ;;  %s3486_s6 = inlined_call_operand.<no memory space> [shape: f32[1,1], index: 6, kind: input, shape index: {}]   ;;  %s3487_s7 = inlined_call_operand.hbm [shape: f32[1,1,128], index: 7, kind: output, shape index: {}]  }
   0x1   :  { %v12_v0 = vstv %s3486_s6 }
   0x2   :  { %13 = vst [vmem:[#allocation2] sm:$0x1] %v12_v0 }
   0x3   :  { %14 = vsyncpa [#allocation4], 0 }
   0x4   :  { %15 = vsyncpa [#allocation5], 0  ;;  %s2628_s26 = smov [#allocation3]  }
   0x5   :  { %s27_s27 = sshll.u32 %s2628_s26, 4  ;;  %s28_s27 = int_to_ptr.vmem [resolvable:$true] %s27_s27 }
   0x6   :  { %s2592_s28 = scalar_lea.vmem %s28_s27, 4096  ;;  %p2597_p1 = scmp.lt.s32.totalorder %s28_s27, %s28_s27 }
   0x7   :  { %p2593_p0 = scmp.ne.s32.totalorder %s28_s27, %s2592_s28  ;;  %p2598_p2 = scmp.lt.s32.totalorder %s2592_s28, %s2592_s28 }
   0x9   :  { %p2599_p3 = por %p2598_p2, %p2597_p1 }
   0xb   :  { %p2600_p4 = pnand %p2599_p3, %p2593_p0 }
   0xd   :  { %2603 = shalt.err (!%p2600_p4)
}
   0xe   :  { %s2629_s29 = smov 128   ;;  %s2630_s30 = smov 8  }
   0xf   :  { %33 = dma.hbm_to_vmem [thread:$0]  %s3483_s3, 4096, %s28_s27, [#allocation4], %s2629_s29, %s2629_s29, %s2630_s30  }
  0x10   :  { %2624 = dma.done.wait [#allocation4], 4096  }
  0x11   :  { %2625 = vsyncadd [#allocation4], 4294963200  ;;  %v2305_v1 = vld [vmem:[%s3481_s1 + $0x74] ss:$8 sps:$4 sm:$0xff]   ;;  %v2631_v3 = vmov 0   ;;  %vm988_vm0 = vcmask 130048  }
  0x12   :  { %v2307_v2 = vld [vmem:[%s3481_s1 + $0x174] ss:$8 sps:$4 sm:$0xff]   ;;  %2304 = vset.pattern.permute.xlu0 %v2631_v3  ;;  %1013 = vmatprep.subr.bf16.mxu0 %v2305_v1  ;;  %v2309_v4 = vld [vmem:[%s3481_s1 + $0x70] ss:$8 sps:$4 sm:$0xff]   ;;  %v2311_v6 = vld [vmem:[%s3481_s1 + $0x64] ss:$8 sps:$4 sm:$0xff]  }
  0x13   :  { %v2310_v5 = vld [vmem:[%s3481_s1 + $0x170] ss:$8 sps:$4 sm:$0xff]   ;;  %1126 = vmatprep.subr.bf16.mxu1 %v2307_v2  ;;  %1014 = vmatpush1.bf16.msra.mxu0 %v2309_v4  ;;  %v2313_v7 = vld [vmem:[%s3481_s1 + $0x164] ss:$8 sps:$4 sm:$0xff]   ;;  %v2315_v8 = vld [vmem:[%s3481_s1 + $0x60] ss:$8 sps:$4 sm:$0xff]  }
  0x14   :  { %1127 = vmatpush1.bf16.msra.mxu1 %v2310_v5  ;;  %1015 = vmatprep.subr.bf16.mxu0 %v2311_v6  ;;  %v2316_v9 = vld [vmem:[%s3481_s1 + $0x160] ss:$8 sps:$4 sm:$0xff]   ;;  %v2317_v10 = vld [vmem:[%s3481_s1 + $0x54] ss:$8 sps:$4 sm:$0xff]   ;;  %v2321_v12 = vld [vmem:[%s3481_s1 + $0x50] ss:$8 sps:$4 sm:$0xff]  }
  0x15   :  { %1128 = vmatprep.subr.bf16.mxu1 %v2313_v7  ;;  %v2319_v11 = vld [vmem:[%s3481_s1 + $0x154] ss:$8 sps:$4 sm:$0xff]   ;;  %v2322_v13 = vld [vmem:[%s3481_s1 + $0x150] ss:$8 sps:$4 sm:$0xff]   ;;  %v2323_v14 = vld [vmem:[%s3481_s1 + $0x44] ss:$8 sps:$4 sm:$0xff]  }
  0x16   :  { %v2325_v15 = vld [vmem:[%s3481_s1 + $0x144] ss:$8 sps:$4 sm:$0xff]   ;;  %v2327_v16 = vld [vmem:[%s3481_s1 + $0x40] ss:$8 sps:$4 sm:$0xff]   ;;  %v2329_v18 = vld [vmem:[%s3481_s1 + $0x34] ss:$8 sps:$4 sm:$0xff]  }
  0x17   :  { %1016 = vmatpush1.bf16.msra.mxu0 %v2315_v8  ;;  %v2328_v17 = vld [vmem:[%s3481_s1 + $0x140] ss:$8 sps:$4 sm:$0xff]   ;;  %v2331_v19 = vld [vmem:[%s3481_s1 + $0x134] ss:$8 sps:$4 sm:$0xff]   ;;  %v2333_v20 = vld [vmem:[%s3481_s1 + $0x30] ss:$8 sps:$4 sm:$0xff]  }
  0x18   :  { %1129 = vmatpush1.bf16.msra.mxu1 %v2316_v9  ;;  %1017 = vmatprep.subr.bf16.mxu0 %v2317_v10  ;;  %v2334_v21 = vld [vmem:[%s3481_s1 + $0x130] ss:$8 sps:$4 sm:$0xff]   ;;  %v2335_v22 = vld [vmem:[%s3481_s1 + $0x24] ss:$8 sps:$4 sm:$0xff]   ;;  %v2339_v24 = vld [vmem:[%s3481_s1 + $0x20] ss:$8 sps:$4 sm:$0xff]  }
  0x19   :  { %1130 = vmatprep.subr.bf16.mxu1 %v2319_v11  ;;  %v2337_v23 = vld [vmem:[%s3481_s1 + $0x124] ss:$8 sps:$4 sm:$0xff]   ;;  %v2340_v25 = vld [vmem:[%s3481_s1 + $0x120] ss:$8 sps:$4 sm:$0xff]   ;;  %v2341_v26 = vld [vmem:[%s3481_s1 + $0x14] ss:$8 sps:$4 sm:$0xff]  }
  0x1a   :  { %v2343_v27 = vld [vmem:[%s3481_s1 + $0x114] ss:$8 sps:$4 sm:$0xff]   ;;  %v2345_v28 = vld [vmem:[%s3481_s1 + $0x10] ss:$8 sps:$4 sm:$0xff]   ;;  %v2347_v30 = vld [vmem:[%s3481_s1 + $0x4] ss:$8 sps:$4 sm:$0xff]  }
  0x1b   :  { %1018 = vmatpush1.bf16.msra.mxu0 %v2321_v12  ;;  %v2346_v29 = vld [vmem:[%s3481_s1 + $0x110] ss:$8 sps:$4 sm:$0xff]   ;;  %v2349_v31 = vld [vmem:[%s3481_s1 + $0x104] ss:$8 sps:$4 sm:$0xff]   ;;  %v2351_v32 = vld [vmem:[%s3481_s1] ss:$8 sps:$4 sm:$0xff]  }
  0x1c   :  { %1131 = vmatpush1.bf16.msra.mxu1 %v2322_v13  ;;  %1019 = vmatprep.subr.bf16.mxu0 %v2323_v14  ;;  %v2352_v33 = vld [vmem:[%s3481_s1 + $0x100] ss:$8 sps:$4 sm:$0xff]   ;;  %v2353_v34 = vld [vmem:[%s3481_s1 + $0xf4] ss:$8 sps:$4 sm:$0xff]   ;;  %v2357_v36 = vld [vmem:[%s3481_s1 + $0xf0] ss:$8 sps:$4 sm:$0xff]  }
  0x1d   :  { %1132 = vmatprep.subr.bf16.mxu1 %v2325_v15  ;;  %v2355_v35 = vld [vmem:[%s3481_s1 + $0x1f4] ss:$8 sps:$4 sm:$0xff]   ;;  %v2358_v37 = vld [vmem:[%s3481_s1 + $0x1f0] ss:$8 sps:$4 sm:$0xff]   ;;  %v2359_v38 = vld [vmem:[%s3481_s1 + $0xe4] ss:$8 sps:$4 sm:$0xff]  }
  0x1e   :  { %v2361_v39 = vld [vmem:[%s3481_s1 + $0x1e4] ss:$8 sps:$4 sm:$0xff]   ;;  %v2363_v40 = vld [vmem:[%s3481_s1 + $0xe0] ss:$8 sps:$4 sm:$0xff]   ;;  %v2365_v42 = vld [vmem:[%s3481_s1 + $0xd4] ss:$8 sps:$4 sm:$0xff]  }
  0x1f   :  { %1020 = vmatpush1.bf16.msra.mxu0 %v2327_v16  ;;  %v2364_v41 = vld [vmem:[%s3481_s1 + $0x1e0] ss:$8 sps:$4 sm:$0xff]   ;;  %v2367_v43 = vld [vmem:[%s3481_s1 + $0x1d4] ss:$8 sps:$4 sm:$0xff]   ;;  %v2369_v44 = vld [vmem:[%s3481_s1 + $0xd0] ss:$8 sps:$4 sm:$0xff]  }
  0x20   :  { %1133 = vmatpush1.bf16.msra.mxu1 %v2328_v17  ;;  %1021 = vmatprep.subr.bf16.mxu0 %v2329_v18  ;;  %v2370_v45 = vld [vmem:[%s3481_s1 + $0x1d0] ss:$8 sps:$4 sm:$0xff]   ;;  %v2371_v46 = vld [vmem:[%s3481_s1 + $0xc4] ss:$8 sps:$4 sm:$0xff]   ;;  %v2375_v48 = vld [vmem:[%s3481_s1 + $0xc0] ss:$8 sps:$4 sm:$0xff]  }
  0x21   :  { %1134 = vmatprep.subr.bf16.mxu1 %v2331_v19  ;;  %v2373_v47 = vld [vmem:[%s3481_s1 + $0x1c4] ss:$8 sps:$4 sm:$0xff]   ;;  %v2376_v49 = vld [vmem:[%s3481_s1 + $0x1c0] ss:$8 sps:$4 sm:$0xff]   ;;  %v2377_v50 = vld [vmem:[%s3481_s1 + $0xb4] ss:$8 sps:$4 sm:$0xff]  }
  0x22   :  { %v2403_v51 = vld [vmem:[%s3480_s0 + $0x4] ss:$28 sps:$4 sm:$0xff]   ;;  %v2379_v52 = vld [vmem:[%s3481_s1 + $0x1b4] ss:$8 sps:$4 sm:$0xff]   ;;  %v2406_v53 = vld [vmem:[%s3480_s0 + $0xc] ss:$28 sps:$4 sm:$0xff]  }
  0x23   :  { %1022 = vmatpush1.bf16.msra.mxu0 %v2333_v20  ;;  %1045 = vmatprep.mubr.bf16.mxu0 %v2403_v51  ;;  %v2381_v54 = vld [vmem:[%s3481_s1 + $0xb0] ss:$8 sps:$4 sm:$0xff]   ;;  %v2383_v56 = vld [vmem:[%s3481_s1 + $0xa4] ss:$8 sps:$4 sm:$0xff]   ;;  %v2387_v58 = vld [vmem:[%s3481_s1 + $0xa0] ss:$8 sps:$4 sm:$0xff]  }
  0x24   :  { %1135 = vmatpush1.bf16.msra.mxu1 %v2334_v21  ;;  %1023 = vmatprep.subr.bf16.mxu0 %v2335_v22  ;;  %v2382_v55 = vld [vmem:[%s3481_s1 + $0x1b0] ss:$8 sps:$4 sm:$0xff]   ;;  %v2385_v57 = vld [vmem:[%s3481_s1 + $0x1a4] ss:$8 sps:$4 sm:$0xff]   ;;  %v2388_v59 = vld [vmem:[%s3481_s1 + $0x1a0] ss:$8 sps:$4 sm:$0xff]  }
  0x25   :  { %1136 = vmatprep.subr.bf16.mxu1 %v2337_v23  ;;  %1158 = vmatprep.mubr.bf16.mxu1 %v2406_v53  ;;  %v2389_v60 = vld [vmem:[%s3481_s1 + $0x94] ss:$8 sps:$4 sm:$0xff]   ;;  %v2393_v62 = vld [vmem:[%s3481_s1 + $0x90] ss:$8 sps:$4 sm:$0xff]   ;;  %v2395_v0 = vld [vmem:[%s3481_s1 + $0x84] ss:$8 sps:$4 sm:$0xff]  }
  0x26   :  { %v2391_v61 = vld [vmem:[%s3481_s1 + $0x194] ss:$8 sps:$4 sm:$0xff]   ;;  %v2394_v63 = vld [vmem:[%s3481_s1 + $0x190] ss:$8 sps:$4 sm:$0xff]   ;;  %v2397_v1 = vld [vmem:[%s3481_s1 + $0x184] ss:$8 sps:$4 sm:$0xff]  }
  0x27   :  { %1024 = vmatpush1.bf16.msra.mxu0 %v2339_v24  ;;  %v2399_v2 = vld [vmem:[%s3481_s1 + $0x80] ss:$8 sps:$4 sm:$0xff]   ;;  %v2409_v5 = vld [vmem:[%s3481_s1 + $0x274] ss:$8 sps:$4 sm:$0xff]   ;;  %v2412_v6 = vld [vmem:[%s3481_s1 + $0x304] ss:$8 sps:$4 sm:$0xff]  }
  0x28   :  { %1137 = vmatpush1.bf16.msra.mxu1 %v2340_v25  ;;  %1025 = vmatprep.subr.bf16.mxu0 %v2341_v26  ;;  %v2400_v4 = vld [vmem:[%s3481_s1 + $0x180] ss:$8 sps:$4 sm:$0xff]   ;;  %v2407_v9 = vld [vmem:[%s3481_s1 + $0x270] ss:$8 sps:$4 sm:$0xff]   ;;  %v2415_v11 = vld [vmem:[%s3481_s1 + $0x264] ss:$8 sps:$4 sm:$0xff]  }
  0x29   :  { %1138 = vmatprep.subr.bf16.mxu1 %v2343_v27  ;;  %v2401_v7 = vld [vmem:[%s3480_s0] ss:$28 sps:$4 sm:$0xff]   ;;  %v2404_v8 = vld [vmem:[%s3480_s0 + $0x8] ss:$28 sps:$4 sm:$0xff]   ;;  %v2420_v16 = vld [vmem:[%s3480_s0 + $0x38] ss:$28 sps:$4 sm:$0xff]  }
  0x2a   :  { %v2410_v10 = vld [vmem:[%s3481_s1 + $0x300] ss:$8 sps:$4 sm:$0xff]   ;;  %v2416_v12 = vld [vmem:[%s3480_s0 + $0x3c] ss:$28 sps:$4 sm:$0xff]   ;;  %v2427_v19 = vld [vmem:[%s3481_s1 + $0x244] ss:$8 sps:$4 sm:$0xff]  }
  0x2b   :  { %1026 = vmatpush1.bf16.msra.mxu0 %v2345_v28  ;;  %v2418_v13 = vld [vmem:[%s3480_s0 + $0x44] ss:$28 sps:$4 sm:$0xff]   ;;  %v2424_v15 = vld [vmem:[%s3481_s1 + $0x254] ss:$8 sps:$4 sm:$0xff]   ;;  %v2422_v18 = vld [vmem:[%s3481_s1 + $0x250] ss:$8 sps:$4 sm:$0xff]  }
  0x2c   :  { %1139 = vmatpush1.bf16.msra.mxu1 %v2346_v29  ;;  %1027 = vmatprep.subr.bf16.mxu0 %v2347_v30  ;;  %v2413_v14 = vld [vmem:[%s3481_s1 + $0x260] ss:$8 sps:$4 sm:$0xff]   ;;  %v2428_v20 = vld [vmem:[%s3480_s0 + $0x74] ss:$28 sps:$4 sm:$0xff]   ;;  %v2430_v21 = vld [vmem:[%s3480_s0 + $0x7c] ss:$28 sps:$4 sm:$0xff]  }
  0x2d   :  { %1140 = vmatprep.subr.bf16.mxu1 %v2349_v31  ;;  %v2421_v17 = vld [vmem:[%s3480_s0 + $0x40] ss:$28 sps:$4 sm:$0xff]   ;;  %v2432_v24 = vld [vmem:[%s3480_s0 + $0x70] ss:$28 sps:$4 sm:$0xff]   ;;  %v2433_v25 = vld [vmem:[%s3480_s0 + $0x78] ss:$28 sps:$4 sm:$0xff]  }
  0x2e   :  { %v2425_v22 = vld [vmem:[%s3481_s1 + $0x240] ss:$8 sps:$4 sm:$0xff]   ;;  %v2436_v23 = vld [vmem:[%s3481_s1 + $0x234] ss:$8 sps:$4 sm:$0xff]   ;;  %v2434_v26 = vld [vmem:[%s3481_s1 + $0x230] ss:$8 sps:$4 sm:$0xff]  }
  0x2f   :  { %1028 = vmatpush1.bf16.msra.mxu0 %v2351_v32  ;;  %v2439_v27 = vld [vmem:[%s3481_s1 + $0x224] ss:$8 sps:$4 sm:$0xff]   ;;  %v2442_v29 = vld [vmem:[%s3480_s0 + $0xb4] ss:$28 sps:$4 sm:$0xff]   ;;  %v2437_v30 = vld [vmem:[%s3481_s1 + $0x220] ss:$8 sps:$4 sm:$0xff]  }
  0x30   :  { %1141 = vmatpush1.bf16.msra.mxu1 %v2352_v33  ;;  %1029 = vmatprep.subr.bf16.mxu0 %v2353_v34  ;;  %v2440_v28 = vld [vmem:[%s3480_s0 + $0xac] ss:$28 sps:$4 sm:$0xff]   ;;  %v2448_v31 = vld [vmem:[%s3481_s1 + $0x214] ss:$8 sps:$4 sm:$0xff]   ;;  %v2446_v34 = vld [vmem:[%s3481_s1 + $0x210] ss:$8 sps:$4 sm:$0xff]  }
  0x31   :  { %1142 = vmatprep.subr.bf16.mxu1 %v2355_v35  ;;  %v2444_v32 = vld [vmem:[%s3480_s0 + $0xa8] ss:$28 sps:$4 sm:$0xff]   ;;  %v2445_v33 = vld [vmem:[%s3480_s0 + $0xb0] ss:$28 sps:$4 sm:$0xff]   ;;  %v2478_v53 = vld [vmem:[%s3480_s0 + $0x15c] ss:$28 sps:$4 sm:$0xff]  }
  0x32   :  { %v2451_v35 = vld [vmem:[%s3481_s1 + $0x204] ss:$8 sps:$4 sm:$0xff]   ;;  %v2476_v51 = vld [vmem:[%s3480_s0 + $0x154] ss:$28 sps:$4 sm:$0xff]  }
  0x33   :  { %1030 = vmatpush2.bf16.msra.mxu0 %v2357_v36  ;;  %v2452_v36 = vld [vmem:[%s3480_s0 + $0xe4] ss:$28 sps:$4 sm:$0xff]  }
  0x34   :  { %1143 = vmatpush2.bf16.msra.mxu1 %v2358_v37  ;;  %1031 = vmatprep.subr.bf16.mxu0 %v2359_v38  ;;  %v2454_v37 = vld [vmem:[%s3480_s0 + $0xec] ss:$28 sps:$4 sm:$0xff]  }
  0x35   :  { %1144 = vmatprep.subr.bf16.mxu1 %v2361_v39  ;;  %v2449_v38 = vld [vmem:[%s3481_s1 + $0x200] ss:$8 sps:$4 sm:$0xff]  }
  0x36   :  { %v2456_v39 = vld [vmem:[%s3480_s0 + $0xe0] ss:$28 sps:$4 sm:$0xff]  }
  0x37   :  { %1032 = vmatpush2.bf16.msra.mxu0 %v2363_v40  ;;  %v2460_v40 = vld [vmem:[%s3481_s1 + $0x2f4] ss:$8 sps:$4 sm:$0xff]  }
  0x38   :  { %1145 = vmatpush2.bf16.msra.mxu1 %v2364_v41  ;;  %1033 = vmatprep.subr.bf16.mxu0 %v2365_v42  ;;  %v2457_v41 = vld [vmem:[%s3480_s0 + $0xe8] ss:$28 sps:$4 sm:$0xff]   ;;  %v2458_v42 = vld [vmem:[%s3481_s1 + $0x2f0] ss:$8 sps:$4 sm:$0xff]  }
  0x39   :  { %1146 = vmatprep.subr.bf16.mxu1 %v2367_v43  ;;  %v2463_v43 = vld [vmem:[%s3481_s1 + $0x2e4] ss:$8 sps:$4 sm:$0xff]  }
  0x3b   :  { %1034 = vmatpush2.bf16.msra.mxu0 %v2369_v44  ;;  %v2464_v44 = vld [vmem:[%s3480_s0 + $0x11c] ss:$28 sps:$4 sm:$0xff]  }
  0x3c   :  { %1147 = vmatpush2.bf16.msra.mxu1 %v2370_v45  ;;  %1035 = vmatprep.subr.bf16.mxu0 %v2371_v46  ;;  %v2466_v45 = vld [vmem:[%s3480_s0 + $0x124] ss:$28 sps:$4 sm:$0xff]  }
  0x3d   :  { %1148 = vmatprep.subr.bf16.mxu1 %v2373_v47  ;;  %v2461_v46 = vld [vmem:[%s3481_s1 + $0x2e0] ss:$8 sps:$4 sm:$0xff]   ;;  %v2468_v47 = vld [vmem:[%s3480_s0 + $0x118] ss:$28 sps:$4 sm:$0xff]  }
  0x3f   :  { %1036 = vmatpush2.bf16.msra.mxu0 %v2375_v48  ;;  %v2472_v48 = vld [vmem:[%s3481_s1 + $0x2d4] ss:$8 sps:$4 sm:$0xff]  }
  0x40   :  { %1149 = vmatpush2.bf16.msra.mxu1 %v2376_v49  ;;  %1037 = vmatprep.subr.bf16.mxu0 %v2377_v50  ;;  %v2469_v49 = vld [vmem:[%s3480_s0 + $0x120] ss:$28 sps:$4 sm:$0xff]   ;;  %v2470_v50 = vld [vmem:[%s3481_s1 + $0x2d0] ss:$8 sps:$4 sm:$0xff]  }
  0x41   :  { %1150 = vmatprep.subr.bf16.mxu1 %v2379_v52  ;;  %v2475_v52 = vld [vmem:[%s3481_s1 + $0x2c4] ss:$8 sps:$4 sm:$0xff]  }
  0x43   :  { %1038 = vmatpush2.bf16.msra.mxu0 %v2381_v54  ;;  %v2473_v54 = vld [vmem:[%s3481_s1 + $0x2c0] ss:$8 sps:$4 sm:$0xff]  }
  0x44   :  { %1151 = vmatpush2.bf16.msra.mxu1 %v2382_v55  ;;  %1039 = vmatprep.subr.bf16.mxu0 %v2383_v56  ;;  %v2484_v55 = vld [vmem:[%s3481_s1 + $0x2b4] ss:$8 sps:$4 sm:$0xff]   ;;  %v2480_v56 = vld [vmem:[%s3480_s0 + $0x150] ss:$28 sps:$4 sm:$0xff]  }
  0x45   :  { %1152 = vmatprep.subr.bf16.mxu1 %v2385_v57  ;;  %v2481_v57 = vld [vmem:[%s3480_s0 + $0x158] ss:$28 sps:$4 sm:$0xff]  }
  0x47   :  { %1040 = vmatpush2.bf16.msra.mxu0 %v2387_v58  ;;  %v2482_v58 = vld [vmem:[%s3481_s1 + $0x2b0] ss:$8 sps:$4 sm:$0xff]  }
  0x48   :  { %1153 = vmatpush2.bf16.msra.mxu1 %v2388_v59  ;;  %1041 = vmatprep.subr.bf16.mxu0 %v2389_v60  ;;  %v2488_v59 = vld [vmem:[%s3480_s0 + $0x18c] ss:$28 sps:$4 sm:$0xff]  }
  0x49   :  { %1154 = vmatprep.subr.bf16.mxu1 %v2391_v61  ;;  %v2487_v60 = vld [vmem:[%s3481_s1 + $0x2a4] ss:$8 sps:$4 sm:$0xff]   ;;  %v2490_v61 = vld [vmem:[%s3480_s0 + $0x194] ss:$28 sps:$4 sm:$0xff]  }
  0x4b   :  { %1042 = vmatpush2.bf16.msra.mxu0 %v2393_v62  ;;  %v2485_v62 = vld [vmem:[%s3481_s1 + $0x2a0] ss:$8 sps:$4 sm:$0xff]  }
  0x4c   :  { %1155 = vmatpush2.bf16.msra.mxu1 %v2394_v63  ;;  %1043 = vmatprep.subr.bf16.mxu0 %v2395_v0  ;;  %v2496_v63 = vld [vmem:[%s3481_s1 + $0x294] ss:$8 sps:$4 sm:$0xff]   ;;  %v2492_v0 = vld [vmem:[%s3480_s0 + $0x188] ss:$28 sps:$4 sm:$0xff]  }
  0x4d   :  { %1156 = vmatprep.subr.bf16.mxu1 %v2397_v1  ;;  %v2493_v1 = vld [vmem:[%s3480_s0 + $0x190] ss:$28 sps:$4 sm:$0xff]  }
  0x4f   :  { %1044 = vmatpush2.bf16.msra.mxu0 %v2399_v2  ;;  %v2494_v2 = vld [vmem:[%s3481_s1 + $0x290] ss:$8 sps:$4 sm:$0xff]  }
  0x50   :  { %1157 = vmatpush2.bf16.msra.mxu1 %v2400_v4  ;;  %1239 = vmatprep.subr.bf16.mxu0 %v2409_v5  ;;  %v2502_v4 = vld [vmem:[%s3480_s0 + $0x14] ss:$28 sps:$4 sm:$0xff]   ;;  %v2499_v5 = vld [vmem:[%s3481_s1 + $0x284] ss:$8 sps:$4 sm:$0xff]  }
  0x51   :  { %1366 = vmatprep.subr.bf16.mxu1 %v2412_v6  ;;  %v2497_v6 = vld [vmem:[%s3481_s1 + $0x280] ss:$8 sps:$4 sm:$0xff]  }
  0x52   :  { %1046 = vmatmul.mubr.bf16.vlgmr.msra.gmra.mxu0 %v2401_v7  ;;  %v2500_v7 = vld [vmem:[%s3480_s0 + $0x10] ss:$28 sps:$4 sm:$0xff]  }
  0x53   :  { %1159 = vmatmul.mubr.bf16.vlgmr.msra.gmra.mxu1 %v2404_v8  ;;  %1240 = vmatpush1.bf16.msra.mxu0 %v2407_v9  ;;  %v2503_v8 = vld [vmem:[%s3480_s0 + $0x18] ss:$28 sps:$4 sm:$0xff]   ;;  %v2504_v9 = vld [vmem:[%s3480_s0 + $0x4c] ss:$28 sps:$4 sm:$0xff]  }
  0x54   :  { %1367 = vmatpush1.bf16.msra.mxu1 %v2410_v10  ;;  %1241 = vmatprep.subr.bf16.mxu0 %v2415_v11  ;;  %v2506_v10 = vld [vmem:[%s3480_s0 + $0x48] ss:$28 sps:$4 sm:$0xff]   ;;  %v2507_v11 = vld [vmem:[%s3480_s0 + $0x50] ss:$28 sps:$4 sm:$0xff]  }
  0x55   :  { %1055 = vmatprep.mubr.bf16.mxu0 %v2416_v12  ;;  %1168 = vmatprep.mubr.bf16.mxu1 %v2418_v13  ;;  %v2508_v12 = vld [vmem:[%s3480_s0 + $0x84] ss:$28 sps:$4 sm:$0xff]  }
  0x56   :  { %v2510_v13 = vld [vmem:[%s3480_s0 + $0x80] ss:$28 sps:$4 sm:$0xff]  }
  0x57   :  { %1242 = vmatpush1.bf16.msra.mxu0 %v2413_v14  ;;  %v2511_v14 = vld [vmem:[%s3480_s0 + $0x88] ss:$28 sps:$4 sm:$0xff]  }
  0x58   :  { %1243 = vmatprep.subr.bf16.mxu0 %v2424_v15  ;;  %v2512_v15 = vld [vmem:[%s3480_s0 + $0xbc] ss:$28 sps:$4 sm:$0xff]  }
  0x5a   :  { %1056 = vmatmul.mubr.bf16.gmra.mxu0 %v2420_v16  ;;  %v2534_v16 = vld [vmem:[#allocation3 + $0x74] ss:$8 sps:$4 sm:$0xff]  }
  0x5b   :  { %1169 = vmatmul.mubr.bf16.gmra.mxu1 %v2421_v17  ;;  %1244 = vmatpush1.bf16.msra.mxu0 %v2422_v18  ;;  %v2532_v17 = vld [vmem:[#allocation3 + $0x70] ss:$8 sps:$4 sm:$0xff]   ;;  %v2537_v18 = vld [vmem:[#allocation3 + $0x64] ss:$8 sps:$4 sm:$0xff]  }
  0x5c   :  { %1065 = vmatprep.mubr.bf16.mxu0 %v2428_v20  ;;  %1245 = vmatprep.subr.bf16.mxu0 %v2427_v19  ;;  %v2514_v19 = vld [vmem:[%s3480_s0 + $0xb8] ss:$28 sps:$4 sm:$0xff]   ;;  %v2515_v20 = vld [vmem:[%s3480_s0 + $0xc0] ss:$28 sps:$4 sm:$0xff]  }
  0x5d   :  { %1178 = vmatprep.mubr.bf16.mxu1 %v2430_v21  ;;  %v2535_v21 = vld [vmem:[#allocation3 + $0x60] ss:$8 sps:$4 sm:$0xff]  }
  0x5f   :  { %1246 = vmatpush1.bf16.msra.mxu0 %v2425_v22  ;;  %v2516_v22 = vld [vmem:[%s3480_s0 + $0xf4] ss:$28 sps:$4 sm:$0xff]  }
  0x60   :  { %1247 = vmatprep.subr.bf16.mxu0 %v2436_v23  ;;  %v2540_v23 = vld [vmem:[#allocation3 + $0x54] ss:$8 sps:$4 sm:$0xff]  }
  0x62   :  { %1066 = vmatmul.mubr.bf16.gmra.mxu0 %v2432_v24  ;;  %v2538_v24 = vld [vmem:[#allocation3 + $0x50] ss:$8 sps:$4 sm:$0xff]  }
  0x63   :  { %1179 = vmatmul.mubr.bf16.gmra.mxu1 %v2433_v25  ;;  %1248 = vmatpush1.bf16.msra.mxu0 %v2434_v26  ;;  %v2543_v25 = vld [vmem:[#allocation3 + $0x44] ss:$8 sps:$4 sm:$0xff]  }
  0x64   :  { %1075 = vmatprep.mubr.bf16.mxu0 %v2440_v28  ;;  %1249 = vmatprep.subr.bf16.mxu0 %v2439_v27  ;;  %v2518_v26 = vld [vmem:[%s3480_s0 + $0xf0] ss:$28 sps:$4 sm:$0xff]   ;;  %v2519_v27 = vld [vmem:[%s3480_s0 + $0xf8] ss:$28 sps:$4 sm:$0xff]  }
  0x65   :  { %1188 = vmatprep.mubr.bf16.mxu1 %v2442_v29  ;;  %v2541_v28 = vld [vmem:[#allocation3 + $0x40] ss:$8 sps:$4 sm:$0xff]  }
  0x66   :  { %v2520_v29 = vld [vmem:[%s3480_s0 + $0x12c] ss:$28 sps:$4 sm:$0xff]  }
  0x67   :  { %1250 = vmatpush1.bf16.msra.mxu0 %v2437_v30  ;;  %v2546_v30 = vld [vmem:[#allocation3 + $0x34] ss:$8 sps:$4 sm:$0xff]  }
  0x68   :  { %1251 = vmatprep.subr.bf16.mxu0 %v2448_v31  ;;  %v2544_v31 = vld [vmem:[#allocation3 + $0x30] ss:$8 sps:$4 sm:$0xff]  }
  0x6a   :  { %1076 = vmatmul.mubr.bf16.gmra.mxu0 %v2444_v32  ;;  %v2549_v32 = vld [vmem:[#allocation3 + $0x24] ss:$8 sps:$4 sm:$0xff]  }
  0x6b   :  { %1189 = vmatmul.mubr.bf16.gmra.mxu1 %v2445_v33  ;;  %1252 = vmatpush1.bf16.msra.mxu0 %v2446_v34  ;;  %v2522_v33 = vld [vmem:[%s3480_s0 + $0x128] ss:$28 sps:$4 sm:$0xff]   ;;  %v2523_v34 = vld [vmem:[%s3480_s0 + $0x130] ss:$28 sps:$4 sm:$0xff]  }
  0x6c   :  { %1085 = vmatprep.mubr.bf16.mxu0 %v2452_v36  ;;  %1253 = vmatprep.subr.bf16.mxu0 %v2451_v35  ;;  %v2547_v35 = vld [vmem:[#allocation3 + $0x20] ss:$8 sps:$4 sm:$0xff]  }
  0x6d   :  { %1198 = vmatprep.mubr.bf16.mxu1 %v2454_v37  ;;  %v2524_v36 = vld [vmem:[%s3480_s0 + $0x164] ss:$28 sps:$4 sm:$0xff]  }
  0x6e   :  { %v2552_v37 = vld [vmem:[#allocation3 + $0x14] ss:$8 sps:$4 sm:$0xff]  }
  0x6f   :  { %1254 = vmatpush1.bf16.msra.mxu0 %v2449_v38  ;;  %v2550_v38 = vld [vmem:[#allocation3 + $0x10] ss:$8 sps:$4 sm:$0xff]  }
  0x70   :  { %1255 = vmatprep.subr.bf16.mxu0 %v2460_v40  ;;  %v2526_v40 = vld [vmem:[%s3480_s0 + $0x160] ss:$28 sps:$4 sm:$0xff]  }
  0x72   :  { %1086 = vmatmul.mubr.bf16.gmra.mxu0 %v2456_v39  ;;  %v2555_v39 = vld [vmem:[#allocation3 + $0x4] ss:$8 sps:$4 sm:$0xff]  }
  0x73   :  { %1199 = vmatmul.mubr.bf16.gmra.mxu1 %v2457_v41  ;;  %1256 = vmatpush2.bf16.msra.mxu0 %v2458_v42  ;;  %v2527_v41 = vld [vmem:[%s3480_s0 + $0x168] ss:$28 sps:$4 sm:$0xff]  }
  0x74   :  { %1095 = vmatprep.mubr.bf16.mxu0 %v2464_v44  ;;  %1257 = vmatprep.subr.bf16.mxu0 %v2463_v43  ;;  %v2553_v42 = vld [vmem:[#allocation3] ss:$8 sps:$4 sm:$0xff]   ;;  %v2528_v43 = vld [vmem:[%s3480_s0 + $0x19c] ss:$28 sps:$4 sm:$0xff]  }
  0x75   :  { %1208 = vmatprep.mubr.bf16.mxu1 %v2466_v45  ;;  %v2558_v44 = vld [vmem:[#allocation3 + $0xf4] ss:$8 sps:$4 sm:$0xff]   ;;  %v2556_v45 = vld [vmem:[#allocation3 + $0xf0] ss:$8 sps:$4 sm:$0xff]  }
  0x77   :  { %1258 = vmatpush2.bf16.msra.mxu0 %v2461_v46  ;;  %v2561_v46 = vld [vmem:[#allocation3 + $0xe4] ss:$8 sps:$4 sm:$0xff]  }
  0x78   :  { %1259 = vmatprep.subr.bf16.mxu0 %v2472_v48  ;;  %v2531_v48 = vld [vmem:[%s3480_s0 + $0x1a0] ss:$28 sps:$4 sm:$0xff]  }
  0x7a   :  { %1096 = vmatmul.mubr.bf16.gmra.mxu0 %v2468_v47  ;;  %v2530_v47 = vld [vmem:[%s3480_s0 + $0x198] ss:$28 sps:$4 sm:$0xff]  }
  0x7b   :  { %1209 = vmatmul.mubr.bf16.gmra.mxu1 %v2469_v49  ;;  %1260 = vmatpush2.bf16.msra.mxu0 %v2470_v50  ;;  %v2559_v49 = vld [vmem:[#allocation3 + $0xe0] ss:$8 sps:$4 sm:$0xff]   ;;  %v2564_v50 = vld [vmem:[#allocation3 + $0xd4] ss:$8 sps:$4 sm:$0xff]  }
  0x7c   :  { %1105 = vmatprep.mubr.bf16.mxu0 %v2476_v51  ;;  %1261 = vmatprep.subr.bf16.mxu0 %v2475_v52  ;;  %v2562_v51 = vld [vmem:[#allocation3 + $0xd0] ss:$8 sps:$4 sm:$0xff]   ;;  %v2565_v52 = vld [vmem:[#allocation3 + $0xc0] ss:$8 sps:$4 sm:$0xff]  }
  0x7d   :  { %1218 = vmatprep.mubr.bf16.mxu1 %v2478_v53  ;;  %v2570_v53 = vld [vmem:[#allocation3 + $0xb4] ss:$8 sps:$4 sm:$0xff]  }
  0x7f   :  { %1262 = vmatpush2.bf16.msra.mxu0 %v2473_v54  ;;  %v2568_v54 = vld [vmem:[#allocation3 + $0xb0] ss:$8 sps:$4 sm:$0xff]  }
  0x80   :  { %1263 = vmatprep.subr.bf16.mxu0 %v2484_v55  ;;  %v2573_v55 = vld [vmem:[#allocation3 + $0xa4] ss:$8 sps:$4 sm:$0xff]  }
  0x82   :  { %1106 = vmatmul.mubr.bf16.gmra.mxu0 %v2480_v56  ;;  %v2571_v56 = vld [vmem:[#allocation3 + $0xa0] ss:$8 sps:$4 sm:$0xff]  }
  0x83   :  { %1219 = vmatmul.mubr.bf16.gmra.mxu1 %v2481_v57  ;;  %1264 = vmatpush2.bf16.msra.mxu0 %v2482_v58  ;;  %v2576_v57 = vld [vmem:[#allocation3 + $0x94] ss:$8 sps:$4 sm:$0xff]   ;;  %v2574_v58 = vld [vmem:[#allocation3 + $0x90] ss:$8 sps:$4 sm:$0xff]  }
  0x84   :  { %1115 = vmatprep.mubr.bf16.mxu0 %v2488_v59  ;;  %1265 = vmatprep.subr.bf16.mxu0 %v2487_v60  ;;  %v2579_v59 = vld [vmem:[#allocation3 + $0x84] ss:$8 sps:$4 sm:$0xff]   ;;  %v2577_v60 = vld [vmem:[#allocation3 + $0x80] ss:$8 sps:$4 sm:$0xff]  }
  0x85   :  { %1228 = vmatprep.mubr.bf16.mxu1 %v2490_v61  ;;  %v208_v61 = vlaneseq }
  0x87   :  { %1266 = vmatpush2.bf16.msra.mxu0 %v2485_v62  ;;  %v3159_v62 = vshrl.u32 %v208_v61, 7 }
  0x88   :  { %1267 = vmatprep.subr.bf16.mxu0 %v2496_v63 }
  0x89   :  { %v3162_v63 = vsub.s32 0, %v3159_v62 }
  0x8a   :  { %1116 = vmatmul.mubr.bf16.gmra.mxu0 %v2492_v0  ;;  %v206_v0 = vld [vmem:[%s3482_s2] sm:$0x3] }
  0x8b   :  { %1229 = vmatmul.mubr.bf16.gmra.mxu1 %v2493_v1  ;;  %1268 = vmatpush2.bf16.msra.mxu0 %v2494_v2  ;;  %v214_v1 = vsub.s32 1, %v3159_v62  ;;  %v3169_v2 = vrot.slane %v206_v0, %v3162_v63 }
  0x8c   :  { %1271 = vmatprep.mubr.bf16.mxu0 %v2502_v4  ;;  %1269 = vmatprep.subr.bf16.mxu0 %v2499_v5 }
  0x8d   :  { %1384 = vmatprep.mubr.bf16.mxu1 %v2631_v3  ;;  %v3173_v4 = vrot.slane %v206_v0, %v214_v1 }
  0x8f   :  { %1270 = vmatpush2.bf16.msra.mxu0 %v2497_v6 }
  0x90   :  { %1781 = vmatprep.subr.bf16.mxu0 %v2534_v16 }
  0x92   :  { %1272 = vmatmul.mubr.bf16.vlgmr.msra.gmra.mxu0 %v2500_v7 }
  0x93   :  { %2257 = vmatmul.mubr.msk.bf16.vlgmr.msra.gmra.mxu1 %vm988_vm0, %v2503_v8  ;;  %1281 = vmatprep.mubr.bf16.mxu0 %v2504_v9 }
  0x94   :  { %1394 = vmatprep.mubr.bf16.mxu1 %v2631_v3  ;;  %1782 = vmatpush1.bf16.msra.mxu0 %v2532_v17 }
  0x95   :  { %1783 = vmatprep.subr.bf16.mxu0 %v2537_v18 }
  0x98   :  { %1784 = vmatpush1.bf16.msra.mxu0 %v2535_v21 }
  0x99   :  { %1785 = vmatprep.subr.bf16.mxu0 %v2540_v23 }
  0x9a   :  { %1282 = vmatmul.mubr.bf16.gmra.mxu0 %v2506_v10 }
  0x9b   :  { %2258 = vmatmul.mubr.msk.bf16.gmra.mxu1 %vm988_vm0, %v2507_v11  ;;  %1291 = vmatprep.mubr.bf16.mxu0 %v2508_v12 }
  0x9c   :  { %1404 = vmatprep.mubr.bf16.mxu1 %v2631_v3  ;;  %1786 = vmatpush1.bf16.msra.mxu0 %v2538_v24 }
  0x9d   :  { %1787 = vmatprep.subr.bf16.mxu0 %v2543_v25 }
  0xa0   :  { %1788 = vmatpush1.bf16.msra.mxu0 %v2541_v28 }
  0xa1   :  { %1789 = vmatprep.subr.bf16.mxu0 %v2546_v30 }
  0xa2   :  { %1292 = vmatmul.mubr.bf16.gmra.mxu0 %v2510_v13 }
  0xa3   :  { %2259 = vmatmul.mubr.msk.bf16.gmra.mxu1 %vm988_vm0, %v2511_v14  ;;  %1301 = vmatprep.mubr.bf16.mxu0 %v2512_v15 }
  0xa4   :  { %1414 = vmatprep.mubr.bf16.mxu1 %v2631_v3  ;;  %1790 = vmatpush1.bf16.msra.mxu0 %v2544_v31 }
  0xa5   :  { %1791 = vmatprep.subr.bf16.mxu0 %v2549_v32 }
  0xa8   :  { %1792 = vmatpush1.bf16.msra.mxu0 %v2547_v35 }
  0xa9   :  { %1793 = vmatprep.subr.bf16.mxu0 %v2552_v37 }
  0xaa   :  { %1302 = vmatmul.mubr.bf16.gmra.mxu0 %v2514_v19 }
  0xab   :  { %2260 = vmatmul.mubr.msk.bf16.gmra.mxu1 %vm988_vm0, %v2515_v20  ;;  %1311 = vmatprep.mubr.bf16.mxu0 %v2516_v22 }
  0xac   :  { %1424 = vmatprep.mubr.bf16.mxu1 %v2631_v3  ;;  %1794 = vmatpush1.bf16.msra.mxu0 %v2550_v38 }
  0xad   :  { %1795 = vmatprep.subr.bf16.mxu0 %v2555_v39 }
  0xb0   :  { %1796 = vmatpush1.bf16.msra.mxu0 %v2553_v42 }
  0xb1   :  { %1797 = vmatprep.subr.bf16.mxu0 %v2558_v44 }
  0xb2   :  { %1312 = vmatmul.mubr.bf16.gmra.mxu0 %v2518_v26 }
  0xb3   :  { %2261 = vmatmul.mubr.msk.bf16.gmra.mxu1 %vm988_vm0, %v2519_v27  ;;  %1321 = vmatprep.mubr.bf16.mxu0 %v2520_v29 }
  0xb4   :  { %1434 = vmatprep.mubr.bf16.mxu1 %v2631_v3  ;;  %1798 = vmatpush2.bf16.msra.mxu0 %v2556_v45 }
  0xb5   :  { %1799 = vmatprep.subr.bf16.mxu0 %v2561_v46 }
  0xb8   :  { %1800 = vmatpush2.bf16.msra.mxu0 %v2559_v49 }
  0xb9   :  { %1801 = vmatprep.subr.bf16.mxu0 %v2564_v50 }
  0xba   :  { %1322 = vmatmul.mubr.bf16.gmra.mxu0 %v2522_v33 }
  0xbb   :  { %2262 = vmatmul.mubr.msk.bf16.gmra.mxu1 %vm988_vm0, %v2523_v34  ;;  %1331 = vmatprep.mubr.bf16.mxu0 %v2524_v36 }
  0xbc   :  { %1444 = vmatprep.mubr.bf16.mxu1 %v2631_v3  ;;  %1802 = vmatpush2.bf16.msra.mxu0 %v2562_v51 }
  0xc2   :  { %1332 = vmatmul.mubr.bf16.gmra.mxu0 %v2526_v40 }
  0xc3   :  { %2263 = vmatmul.mubr.msk.bf16.gmra.mxu1 %vm988_vm0, %v2527_v41  ;;  %1341 = vmatprep.mubr.bf16.mxu0 %v2528_v43 }
  0xc4   :  { %1454 = vmatprep.mubr.bf16.mxu1 %v2631_v3  ;;  %v2567_v3 = vld [vmem:[#allocation3 + $0xc4] ss:$8 sps:$4 sm:$0xff]  }
  0xc5   :  { %1803 = vmatprep.subr.bf16.mxu0 %v2567_v3 }
  0xc6   :  { %1804 = vmatpush2.bf16.msra.mxu0 %v2565_v52 }
  0xc7   :  { %1805 = vmatprep.subr.bf16.mxu0 %v2570_v53 }
  0xca   :  { %1342 = vmatmul.mubr.bf16.gmra.mxu0 %v2530_v47 }
  0xcb   :  { %2264 = vmatmul.mubr.msk.bf16.gmra.mxu1 %vm988_vm0, %v2531_v48  ;;  %1806 = vmatpush2.bf16.msra.mxu0 %v2568_v54 }
  0xcc   :  { %1807 = vmatprep.subr.bf16.mxu0 %v2573_v55 }
  0xcf   :  { %1808 = vmatpush2.bf16.msra.mxu0 %v2571_v56 }
  0xd0   :  { %1809 = vmatprep.subr.bf16.mxu0 %v2576_v57 }
  0xd3   :  { %1810 = vmatpush2.bf16.msra.mxu0 %v2574_v58 }
  0xd4   :  { %1811 = vmatprep.subr.bf16.mxu0 %v2579_v59 }
  0xd7   :  { %1812 = vmatpush2.bf16.msra.mxu0 %v2577_v60 }
 0x112   :  { %v1047_v5 = vpop.f32.mrf.mxu0 }
 0x113   :  { %v1160_v6 = vpop.f32.mrf.mxu1  ;;  %v1048_v7 = vadd.f32 %v1047_v5, %v3169_v2 }
 0x114   :  { %v1049_v8 = vpop.f32.mrf.mxu0 }
 0x115   :  { %v1162_v9 = vpop.f32.mrf.mxu1  ;;  %v3176_v10 = vadd.f32 %v1160_v6, %v1048_v7  ;;  %v1050_v11 = vadd.f32 %v1049_v8, %v3173_v4 }
 0x116   :  { %v1051_v12 = vpop.f32.mrf.mxu0 }
 0x117   :  { %v1164_v13 = vpop.f32.mrf.mxu1  ;;  %v3179_v14 = vadd.f32 %v1162_v9, %v1050_v11  ;;  %v1052_v15 = vadd.f32 %v1051_v12, %v3169_v2 }
 0x118   :  { %v3182_v16 = vpop.f32.mrf.mxu0 }
 0x119   :  { %v3184_v17 = vpop.f32.mrf.mxu1  ;;  %v3186_v18 = vadd.f32 %v1164_v13, %v1052_v15 }
 0x11a   :  { %v1057_v19 = vpop.f32.mrf.mxu0 }
 0x11b   :  { %v1170_v20 = vpop.f32.mrf.mxu1  ;;  %v1058_v21 = vadd.f32 %v1057_v19, %v3169_v2 }
 0x11c   :  { %v1059_v22 = vpop.f32.mrf.mxu0 }
 0x11d   :  { %v1172_v23 = vpop.f32.mrf.mxu1  ;;  %v3189_v24 = vadd.f32 %v1170_v20, %v1058_v21  ;;  %v1060_v25 = vadd.f32 %v1059_v22, %v3173_v4 }
 0x11e   :  { %v1061_v26 = vpop.f32.mrf.mxu0 }
 0x11f   :  { %v1174_v27 = vpop.f32.mrf.mxu1  ;;  %v3192_v28 = vadd.f32 %v1172_v23, %v1060_v25  ;;  %v1062_v29 = vadd.f32 %v1061_v26, %v3169_v2 }
 0x120   :  { %v3195_v30 = vpop.f32.mrf.mxu0 }
 0x121   :  { %v3197_v31 = vpop.f32.mrf.mxu1  ;;  %v3199_v32 = vadd.f32 %v1174_v27, %v1062_v29 }
 0x122   :  { %v1067_v33 = vpop.f32.mrf.mxu0 }
 0x123   :  { %v1180_v34 = vpop.f32.mrf.mxu1  ;;  %v1068_v35 = vadd.f32 %v1067_v33, %v3169_v2 }
 0x124   :  { %v1069_v36 = vpop.f32.mrf.mxu0 }
 0x125   :  { %v1182_v37 = vpop.f32.mrf.mxu1  ;;  %v3202_v38 = vadd.f32 %v1180_v34, %v1068_v35  ;;  %v1070_v39 = vadd.f32 %v1069_v36, %v3173_v4 }
 0x126   :  { %v1071_v40 = vpop.f32.mrf.mxu0 }
 0x127   :  { %v1184_v41 = vpop.f32.mrf.mxu1  ;;  %v3205_v42 = vadd.f32 %v1182_v37, %v1070_v39  ;;  %v1072_v43 = vadd.f32 %v1071_v40, %v3169_v2 }
 0x128   :  { %v3208_v44 = vpop.f32.mrf.mxu0 }
 0x129   :  { %v3210_v45 = vpop.f32.mrf.mxu1  ;;  %v3212_v46 = vadd.f32 %v1184_v41, %v1072_v43 }
 0x12a   :  { %v1077_v47 = vpop.f32.mrf.mxu0 }
 0x12b   :  { %v1190_v48 = vpop.f32.mrf.mxu1  ;;  %v1078_v49 = vadd.f32 %v1077_v47, %v3169_v2 }
 0x12c   :  { %v1079_v50 = vpop.f32.mrf.mxu0 }
 0x12d   :  { %v1192_v51 = vpop.f32.mrf.mxu1  ;;  %v3215_v3 = vadd.f32 %v1190_v48, %v1078_v49  ;;  %v1080_v52 = vadd.f32 %v1079_v50, %v3173_v4 }
 0x12e   :  { %v1081_v53 = vpop.f32.mrf.mxu0 }
 0x12f   :  { %v1194_v54 = vpop.f32.mrf.mxu1  ;;  %v3218_v55 = vadd.f32 %v1192_v51, %v1080_v52  ;;  %v1082_v56 = vadd.f32 %v1081_v53, %v3169_v2 }
 0x130   :  { %v3221_v57 = vpop.f32.mrf.mxu0 }
 0x131   :  { %v3223_v58 = vpop.f32.mrf.mxu1  ;;  %v3225_v59 = vadd.f32 %v1194_v54, %v1082_v56 }
 0x132   :  { %v1087_v60 = vpop.f32.mrf.mxu0 }
 0x133   :  { %v1200_v61 = vpop.f32.mrf.mxu1  ;;  %v1088_v0 = vadd.f32 %v1087_v60, %v3169_v2 }
 0x134   :  { %v1089_v5 = vpop.f32.mrf.mxu0 }
 0x135   :  { %v1202_v6 = vpop.f32.mrf.mxu1  ;;  %v3228_v7 = vadd.f32 %v1200_v61, %v1088_v0  ;;  %v1090_v8 = vadd.f32 %v1089_v5, %v3173_v4 }
 0x136   :  { %v1091_v9 = vpop.f32.mrf.mxu0 }
 0x137   :  { %v1204_v11 = vpop.f32.mrf.mxu1  ;;  %v3231_v12 = vadd.f32 %v1202_v6, %v1090_v8  ;;  %v1092_v13 = vadd.f32 %v1091_v9, %v3169_v2 }
 0x138   :  { %v3234_v15 = vpop.f32.mrf.mxu0 }
 0x139   :  { %v3236_v19 = vpop.f32.mrf.mxu1  ;;  %v3238_v20 = vadd.f32 %v1204_v11, %v1092_v13 }
 0x13a   :  { %v1097_v21 = vpop.f32.mrf.mxu0 }
 0x13b   :  { %v1210_v22 = vpop.f32.mrf.mxu1  ;;  %v1098_v23 = vadd.f32 %v1097_v21, %v3169_v2 }
 0x13c   :  { %v1099_v25 = vpop.f32.mrf.mxu0 }
 0x13d   :  { %v1212_v26 = vpop.f32.mrf.mxu1  ;;  %v3241_v27 = vadd.f32 %v1210_v22, %v1098_v23  ;;  %v1100_v29 = vadd.f32 %v1099_v25, %v3173_v4 }
 0x13e   :  { %v1101_v33 = vpop.f32.mrf.mxu0 }
 0x13f   :  { %v1214_v34 = vpop.f32.mrf.mxu1  ;;  %v3244_v35 = vadd.f32 %v1212_v26, %v1100_v29  ;;  %v1102_v36 = vadd.f32 %v1101_v33, %v3169_v2 }
 0x140   :  { %v3247_v37 = vpop.f32.mrf.mxu0 }
 0x141   :  { %v3249_v39 = vpop.f32.mrf.mxu1  ;;  %v3251_v40 = vadd.f32 %v1214_v34, %v1102_v36 }
 0x142   :  { %v1107_v41 = vpop.f32.mrf.mxu0 }
 0x143   :  { %v1220_v43 = vpop.f32.mrf.mxu1  ;;  %v1108_v47 = vadd.f32 %v1107_v41, %v3169_v2 }
 0x144   :  { %v1109_v48 = vpop.f32.mrf.mxu0 }
 0x145   :  { %v1222_v49 = vpop.f32.mrf.mxu1  ;;  %v3254_v50 = vadd.f32 %v1220_v43, %v1108_v47  ;;  %v1110_v51 = vadd.f32 %v1109_v48, %v3173_v4  ;;  %v1054_v47 = vadd.f32 %v3182_v16, %v3173_v4 }
 0x146   :  { %v1111_v52 = vpop.f32.mrf.mxu0 }
 0x147   :  { %v1224_v53 = vpop.f32.mrf.mxu1  ;;  %v3257_v54 = vadd.f32 %v1222_v49, %v1110_v51  ;;  %v1112_v56 = vadd.f32 %v1111_v52, %v3169_v2 }
 0x148   :  { %v3260_v60 = vpop.f32.mrf.mxu0 }
 0x149   :  { %v3262_v61 = vpop.f32.mrf.mxu1  ;;  %v3264_v0 = vadd.f32 %v1224_v53, %v1112_v56 }
 0x14a   :  { %v1117_v5 = vpop.f32.mrf.mxu0 }
 0x14b   :  { %v1230_v6 = vpop.f32.mrf.mxu1  ;;  %v1118_v8 = vadd.f32 %v1117_v5, %v3169_v2  ;;  %v1167_v5 = vadd.f32 %v3184_v17, %v1054_v47 }
 0x14c   :  { %v1119_v9 = vpop.f32.mrf.mxu0 }
 0x14d   :  { %v1232_v11 = vpop.f32.mrf.mxu1  ;;  %v3267_v13 = vadd.f32 %v1230_v6, %v1118_v8  ;;  %v1120_v21 = vadd.f32 %v1119_v9, %v3173_v4 }
 0x14e   :  { %v1121_v22 = vpop.f32.mrf.mxu0 }
 0x14f   :  { %v1234_v23 = vpop.f32.mrf.mxu1  ;;  %v3270_v25 = vadd.f32 %v1232_v11, %v1120_v21  ;;  %v1122_v26 = vadd.f32 %v1121_v22, %v3169_v2 }
 0x150   :  { %v3273_v29 = vpop.f32.mrf.mxu0 }
 0x151   :  { %v3275_v33 = vpop.f32.mrf.mxu1  ;;  %v3277_v34 = vadd.f32 %v1234_v23, %v1122_v26  ;;  %v1064_v23 = vadd.f32 %v3195_v30, %v3173_v4 }
 0x152   :  { %v1273_v36 = vpop.f32.mrf.mxu0 }
 0x153   :  { %v1386_v41 = vpop.f32.mrf.mxu1  ;;  %v1274_v43 = vadd.f32 %v1273_v36, %v3176_v10  ;;  %v1177_v30 = vadd.f32 %v3197_v31, %v1064_v23 }
 0x154   :  { %v1275_v48 = vpop.f32.mrf.mxu0 }
 0x155   :  { %v1388_v49 = vpop.f32.mrf.mxu1  ;;  %v1387_v51 = vadd.f32 %v1386_v41, %v1274_v43  ;;  %v1276_v52 = vadd.f32 %v1275_v48, %v3179_v14 }
 0x156   :  { %v1277_v53 = vpop.f32.mrf.mxu0 }
 0x157   :  { %v1390_v2 = vpop.f32.mrf.mxu1  ;;  %v1278_v56 = vadd.f32 %v1277_v53, %v3186_v18  ;;  %v1497_v6 = vmul.f32 0.2, %v1387_v51  ;;  %vm1465_vm1 = vcmp.ge.f32.partialorder %v1387_v51, 0.0  ;;  %v1389_v11 = vadd.f32 %v1388_v49, %v1276_v52 }
 0x158   :  { %v1279_v8 = vpop.f32.mrf.mxu0 }
 0x159   :  { %v1392_v9 = vpop.f32.mrf.mxu1  ;;  %v1391_v10 = vadd.f32 %v1390_v2, %v1278_v56  ;;  %v1280_v21 = vadd.f32 %v1279_v8, %v1167_v5  ;;  %v1529_v36 = vsel %vm1465_vm1, %v1387_v51, %v1497_v6  ;;  %vm1466_vm3 = vcmp.ge.f32.partialorder %v1389_v11, 0.0 }
 0x15a   :  { %v1283_v22 = vpop.f32.mrf.mxu0  ;;  %v1498_v43 = vmul.f32 0.2, %v1389_v11 }
 0x15b   :  { %v1396_v16 = vpop.f32.mrf.mxu1  ;;  %vm1467_vm2 = vcmp.ge.f32.partialorder %v1391_v10, 0.0  ;;  %v1499_v14 = vmul.f32 0.2, %v1391_v10  ;;  %v1284_v26 = vadd.f32 %v1283_v22, %v3189_v24  ;;  %v1393_v18 = vadd.f32 %v1392_v9, %v1280_v21 }
 0x15c   :  { %v1285_v41 = vpop.f32.mrf.mxu0 }
 0x15d   :  { %v1398_v17 = vpop.f32.mrf.mxu1  ;;  %v1531_v47 = vsel %vm1467_vm2, %v1391_v10, %v1499_v14  ;;  %v1286_v48 = vadd.f32 %v1285_v41, %v3192_v28  ;;  %vm1468_vm4 = vcmp.ge.f32.partialorder %v1393_v18, 0.0  ;;  %v1500_v52 = vmul.f32 0.2, %v1393_v18 }
 0x15e   :  { %v1561_v49 = vpack.c.bf16 %v1531_v47, %v1529_v36  ;;  %v1397_v53 = vadd.f32 %v1396_v16, %v1284_v26  ;;  %v1287_v2 = vpop.f32.mrf.mxu0  ;;  %v1530_v10 = vsel %vm1466_vm3, %v1389_v11, %v1498_v43  ;;  %v1074_v28 = vadd.f32 %v3208_v44, %v3173_v4 }
 0x15f   :  { %v1400_v56 = vpop.f32.mrf.mxu1  ;;  %v1288_v5 = vadd.f32 %v1287_v2, %v3199_v32  ;;  %v1532_v6 = vsel %vm1468_vm4, %v1393_v18, %v1500_v52  ;;  %v1399_v8 = vadd.f32 %v1398_v17, %v1286_v48 }
 0x160   :  { %v1289_v24 = vpop.f32.mrf.mxu0  ;;  %v1501_v22 = vmul.f32 0.2, %v1397_v53  ;;  %v1562_v26 = vpack.c.bf16 %v1532_v6, %v1530_v10  ;;  %vm1469_vm6 = vcmp.ge.f32.partialorder %v1397_v53, 0.0  ;;  %v1187_v52 = vadd.f32 %v3210_v45, %v1074_v28 }
 0x161   :  { %v1402_v51 = vpop.f32.mrf.mxu1  ;;  %v1401_v9 = vadd.f32 %v1400_v56, %v1288_v5  ;;  %v1290_v21 = vadd.f32 %v1289_v24, %v1177_v30  ;;  %v1502_v41 = vmul.f32 0.2, %v1399_v8  ;;  %vm1470_vm8 = vcmp.ge.f32.partialorder %v1399_v8, 0.0 }
 0x162   :  { %v1293_v14 = vpop.f32.mrf.mxu0  ;;  %1813 = vmatprep.mubr.bf16.mxu0 %v1562_v26  ;;  %v1533_v2 = vsel %vm1469_vm6, %v1397_v53, %v1501_v22 }
 0x163   :  { %v1406_v16 = vpop.f32.mrf.mxu1  ;;  %vm1471_vm5 = vcmp.ge.f32.partialorder %v1401_v9, 0.0  ;;  %v1503_v36 = vmul.f32 0.2, %v1401_v9  ;;  %v1403_v31 = vadd.f32 %v1402_v51, %v1290_v21  ;;  %v1294_v32 = vadd.f32 %v1293_v14, %v3202_v38  ;;  %1814 = vmatmul.mubr.bf16.vlgmr.msra.gmra.mxu0 %v1561_v49 }
 0x164   :  { %v1295_v23 = vpop.f32.mrf.mxu0  ;;  %v1084_v21 = vadd.f32 %v3221_v57, %v3173_v4 }
 0x165   :  { %v1408_v18 = vpop.f32.mrf.mxu1  ;;  %vm1472_vm7 = vcmp.ge.f32.partialorder %v1403_v31, 0.0  ;;  %v1504_v17 = vmul.f32 0.2, %v1403_v31  ;;  %v1296_v11 = vadd.f32 %v1295_v23, %v3205_v42  ;;  %v1407_v44 = vadd.f32 %v1406_v16, %v1294_v32 }
 0x166   :  { %v1297_v43 = vpop.f32.mrf.mxu0  ;;  %v1535_v48 = vsel %vm1471_vm5, %v1401_v9, %v1503_v36  ;;  %v1534_v42 = vsel %vm1470_vm8, %v1399_v8, %v1502_v41 }
 0x167   :  { %v1410_v47 = vpop.f32.mrf.mxu1  ;;  %v1298_v38 = vadd.f32 %v1297_v43, %v3212_v46  ;;  %v1536_v5 = vsel %vm1472_vm7, %v1403_v31, %v1504_v17  ;;  %v1563_v24 = vpack.c.bf16 %v1535_v48, %v1533_v2  ;;  %v1409_v51 = vadd.f32 %v1408_v18, %v1296_v11 }
 0x168   :  { %v1299_v56 = vpop.f32.mrf.mxu0  ;;  %v1505_v10 = vmul.f32 0.2, %v1407_v44  ;;  %v1564_v16 = vpack.c.bf16 %v1536_v5, %v1534_v42  ;;  %vm1473_vm10 = vcmp.ge.f32.partialorder %v1407_v44, 0.0  ;;  %v1197_v18 = vadd.f32 %v3223_v58, %v1084_v21 }
 0x169   :  { %v1412_v30 = vpop.f32.mrf.mxu1  ;;  %v1411_v49 = vadd.f32 %v1410_v47, %v1298_v38  ;;  %v1300_v6 = vadd.f32 %v1299_v56, %v1187_v52  ;;  %v1506_v26 = vmul.f32 0.2, %v1409_v51  ;;  %vm1474_vm12 = vcmp.ge.f32.partialorder %v1409_v51, 0.0 }
 0x16a   :  { %v1303_v14 = vpop.f32.mrf.mxu0  ;;  %1823 = vmatprep.mubr.bf16.mxu0 %v1564_v16  ;;  %v1537_v41 = vsel %vm1473_vm10, %v1407_v44, %v1505_v10  ;;  %v1094_v2 = vadd.f32 %v3234_v15, %v3173_v4 }
 0x16b   :  { %v1416_v9 = vpop.f32.mrf.mxu1  ;;  %vm1475_vm9 = vcmp.ge.f32.partialorder %v1411_v49, 0.0  ;;  %v1507_v45 = vmul.f32 0.2, %v1411_v49  ;;  %v1413_v46 = vadd.f32 %v1412_v30, %v1300_v6  ;;  %v1304_v53 = vadd.f32 %v1303_v14, %v3215_v3  ;;  %1824 = vmatmul.mubr.bf16.gmra.mxu0 %v1563_v24 }
 0x16c   :  { %v1305_v28 = vpop.f32.mrf.mxu0  ;;  %v1207_v16 = vadd.f32 %v3236_v19, %v1094_v2 }
 0x16d   :  { %v1418_v22 = vpop.f32.mrf.mxu1  ;;  %vm1476_vm11 = vcmp.ge.f32.partialorder %v1413_v46, 0.0  ;;  %v1508_v36 = vmul.f32 0.2, %v1413_v46  ;;  %v1306_v8 = vadd.f32 %v1305_v28, %v3218_v55  ;;  %v1417_v57 = vadd.f32 %v1416_v9, %v1304_v53 }
 0x16e   :  { %v1307_v31 = vpop.f32.mrf.mxu0  ;;  %v1539_v23 = vsel %vm1475_vm9, %v1411_v49, %v1507_v45  ;;  %v1538_v55 = vsel %vm1474_vm12, %v1409_v51, %v1506_v26 }
 0x16f   :  { %v1420_v32 = vpop.f32.mrf.mxu1  ;;  %v1308_v3 = vadd.f32 %v1307_v31, %v3225_v59  ;;  %v1540_v43 = vsel %vm1476_vm11, %v1413_v46, %v1508_v36  ;;  %v1565_v47 = vpack.c.bf16 %v1539_v23, %v1537_v41  ;;  %v1419_v48 = vadd.f32 %v1418_v22, %v1306_v8 }
 0x170   :  { %v1309_v17 = vpop.f32.mrf.mxu0  ;;  %v1509_v56 = vmul.f32 0.2, %v1417_v57  ;;  %v1566_v24 = vpack.c.bf16 %v1540_v43, %v1538_v55  ;;  %vm1477_vm14 = vcmp.ge.f32.partialorder %v1417_v57, 0.0  ;;  %v1104_v31 = vadd.f32 %v3247_v37, %v3173_v4 }
 0x171   :  { %v1422_v11 = vpop.f32.mrf.mxu1  ;;  %v1421_v52 = vadd.f32 %v1420_v32, %v1308_v3  ;;  %v1310_v38 = vadd.f32 %v1309_v17, %v1197_v18  ;;  %v1510_v42 = vmul.f32 0.2, %v1419_v48  ;;  %vm1478_vm0 = vcmp.ge.f32.partialorder %v1419_v48, 0.0 }
 0x172   :  { %v1313_v30 = vpop.f32.mrf.mxu0  ;;  %1833 = vmatprep.mubr.bf16.mxu0 %v1566_v24  ;;  %v1541_v45 = vsel %vm1477_vm14, %v1417_v57, %v1509_v56  ;;  %v1217_v55 = vadd.f32 %v3249_v39, %v1104_v31 }
 0x173   :  { %v1426_v5 = vpop.f32.mrf.mxu1  ;;  %vm1479_vm13 = vcmp.ge.f32.partialorder %v1421_v52, 0.0  ;;  %v1511_v58 = vmul.f32 0.2, %v1421_v52  ;;  %v1423_v59 = vadd.f32 %v1422_v11, %v1310_v38  ;;  %v1314_v44 = vadd.f32 %v1313_v30, %v3228_v7  ;;  %1834 = vmatmul.mubr.bf16.gmra.mxu0 %v1565_v47 }
 0x174   :  { %v1315_v49 = vpop.f32.mrf.mxu0 }
 0x175   :  { %v1428_v6 = vpop.f32.mrf.mxu1  ;;  %vm1480_vm15 = vcmp.ge.f32.partialorder %v1423_v59, 0.0  ;;  %v1512_v21 = vmul.f32 0.2, %v1423_v59  ;;  %v1316_v51 = vadd.f32 %v1315_v49, %v3231_v12  ;;  %v1427_v15 = vadd.f32 %v1426_v5, %v1314_v44 }
 0x176   :  { %v1317_v10 = vpop.f32.mrf.mxu0  ;;  %v1543_v9 = vsel %vm1479_vm13, %v1421_v52, %v1511_v58  ;;  %v1542_v12 = vsel %vm1478_vm0, %v1419_v48, %v1510_v42  ;;  %v1114_v49 = vadd.f32 %v3260_v60, %v3173_v4 }
 0x177   :  { %v1430_v14 = vpop.f32.mrf.mxu1  ;;  %v1318_v7 = vadd.f32 %v1317_v10, %v3238_v20  ;;  %v1544_v28 = vsel %vm1480_vm15, %v1423_v59, %v1512_v21  ;;  %v1567_v22 = vpack.c.bf16 %v1543_v9, %v1541_v45  ;;  %v1429_v26 = vadd.f32 %v1428_v6, %v1316_v51 }
 0x178   :  { %v1319_v46 = vpop.f32.mrf.mxu0  ;;  %v1513_v32 = vmul.f32 0.2, %v1427_v15  ;;  %v1568_v3 = vpack.c.bf16 %v1544_v28, %v1542_v12  ;;  %vm1481_vm2 = vcmp.ge.f32.partialorder %v1427_v15, 0.0  ;;  %v1227_v28 = vadd.f32 %v3262_v61, %v1114_v49 }
 0x179   :  { %v1432_v53 = vpop.f32.mrf.mxu1  ;;  %v1431_v36 = vadd.f32 %v1430_v14, %v1318_v7  ;;  %v1320_v8 = vadd.f32 %v1319_v46, %v1207_v16  ;;  %v1514_v11 = vmul.f32 0.2, %v1429_v26  ;;  %vm1482_vm4 = vcmp.ge.f32.partialorder %v1429_v26, 0.0 }
 0x17a   :  { %v1323_v23 = vpop.f32.mrf.mxu0  ;;  %1843 = vmatprep.mubr.bf16.mxu0 %v1568_v3  ;;  %v1545_v2 = vsel %vm1481_vm2, %v1427_v15, %v1513_v32 }
 0x17b   :  { %v1436_v18 = vpop.f32.mrf.mxu1  ;;  %vm1483_vm1 = vcmp.ge.f32.partialorder %v1431_v36, 0.0  ;;  %v1515_v19 = vmul.f32 0.2, %v1431_v36  ;;  %v1433_v20 = vadd.f32 %v1432_v53, %v1320_v8  ;;  %v1324_v57 = vadd.f32 %v1323_v23, %v3241_v27  ;;  %1844 = vmatmul.mubr.bf16.gmra.mxu0 %v1567_v22 }
 0x17c   :  { %v1325_v41 = vpop.f32.mrf.mxu0 }
 0x17d   :  { %v1438_v17 = vpop.f32.mrf.mxu1  ;;  %vm1484_vm3 = vcmp.ge.f32.partialorder %v1433_v20, 0.0  ;;  %v1516_v43 = vmul.f32 0.2, %v1433_v20  ;;  %v1326_v47 = vadd.f32 %v1325_v41, %v3244_v35  ;;  %v1437_v37 = vadd.f32 %v1436_v18, %v1324_v57 }
 0x17e   :  { %v1327_v48 = vpop.f32.mrf.mxu0  ;;  %v1547_v38 = vsel %vm1483_vm1, %v1431_v36, %v1515_v19  ;;  %v1546_v35 = vsel %vm1482_vm4, %v1429_v26, %v1514_v11  ;;  %v1124_v18 = vadd.f32 %v3273_v29, %v3173_v4 }
 0x17f   :  { %v1440_v52 = vpop.f32.mrf.mxu1  ;;  %v1328_v27 = vadd.f32 %v1327_v48, %v3251_v40  ;;  %v1548_v5 = vsel %vm1484_vm3, %v1433_v20, %v1516_v43  ;;  %v1569_v24 = vpack.c.bf16 %v1547_v38, %v1545_v2  ;;  %v1439_v58 = vadd.f32 %v1438_v17, %v1326_v47 }
 0x180   :  { %v1329_v56 = vpop.f32.mrf.mxu0  ;;  %v1517_v6 = vmul.f32 0.2, %v1437_v37  ;;  %v1570_v51 = vpack.c.bf16 %v1548_v5, %v1546_v35  ;;  %vm1485_vm6 = vcmp.ge.f32.partialorder %v1437_v37, 0.0  ;;  %v1237_v38 = vadd.f32 %v3275_v33, %v1124_v18 }
 0x181   :  { %v1442_v30 = vpop.f32.mrf.mxu1  ;;  %v1441_v59 = vadd.f32 %v1440_v52, %v1328_v27  ;;  %v1330_v44 = vadd.f32 %v1329_v56, %v1217_v55  ;;  %v1518_v9 = vmul.f32 0.2, %v1439_v58  ;;  %vm1486_vm8 = vcmp.ge.f32.partialorder %v1439_v58, 0.0 }
 0x182   :  { %v1333_v42 = vpop.f32.mrf.mxu0  ;;  %1853 = vmatprep.mubr.bf16.mxu0 %v1570_v51  ;;  %v1549_v22 = vsel %vm1485_vm6, %v1437_v37, %v1517_v6 }
 0x183   :  { %v1446_v21 = vpop.f32.mrf.mxu1  ;;  %vm1487_vm5 = vcmp.ge.f32.partialorder %v1441_v59, 0.0  ;;  %v1519_v39 = vmul.f32 0.2, %v1441_v59  ;;  %v1443_v40 = vadd.f32 %v1442_v30, %v1330_v44  ;;  %v1334_v15 = vadd.f32 %v1333_v42, %v3254_v50  ;;  %1854 = vmatmul.mubr.bf16.gmra.mxu0 %v1569_v24 }
 0x184   :  { %v1335_v10 = vpop.f32.mrf.mxu0 }
 0x185   :  { %v1448_v14 = vpop.f32.mrf.mxu1  ;;  %vm1488_vm7 = vcmp.ge.f32.partialorder %v1443_v40, 0.0  ;;  %v1520_v16 = vmul.f32 0.2, %v1443_v40  ;;  %v1336_v7 = vadd.f32 %v1335_v10, %v3257_v54  ;;  %v1447_v60 = vadd.f32 %v1446_v21, %v1334_v15  ;;  %v1609_v15 = vld [vmem:[%s3484_s4] sm:$0x3]  ;;  %s2633_s4 = smov [#allocation6]  }
 0x186   :  { %v1337_v45 = vpop.f32.mrf.mxu0  ;;  %v1551_v53 = vsel %vm1487_vm5, %v1441_v59, %v1519_v39  ;;  %v1550_v54 = vsel %vm1486_vm8, %v1439_v58, %v1518_v9  ;;  %v3344_v10 = vrot.slane %v1609_v15, %v3162_v63 }
 0x187   :  { %v1450_v46 = vpop.f32.mrf.mxu1  ;;  %v1338_v50 = vadd.f32 %v1337_v45, %v3264_v0  ;;  %v1449_v26 = vadd.f32 %v1448_v14, %v1336_v7  ;;  %v1552_v12 = vsel %vm1488_vm7, %v1443_v40, %v1520_v16  ;;  %v1571_v31 = vpack.c.bf16 %v1551_v53, %v1549_v22  ;;  %v3353_v7 = vld.sshfl [vmem:[%s3485_s5] sm:$0x11 pattern:$0x75316420]  ;;  %s2094_s5 = sshll.u32 %s2633_s4, 4  ;;  %s2095_s5 = int_to_ptr.vmem [resolvable:$true] %s2094_s5 }
 0x188   :  { %v1339_v36 = vpop.f32.mrf.mxu0  ;;  %v1521_v3 = vmul.f32 0.2, %v1447_v60  ;;  %v1572_v57 = vpack.c.bf16 %v1552_v12, %v1550_v54  ;;  %vm1489_vm10 = vcmp.ge.f32.partialorder %v1447_v60, 0.0  ;;  %v2632_v14 = vmov 1966171168   ;;  %s2604_s18 = scalar_lea.vmem %s2095_s5, 16  ;;  %p2609_p6 = scmp.lt.s32.totalorder %s2095_s5, %s2095_s5 }
 0x189   :  { %v1452_v8 = vpop.f32.mrf.mxu1  ;;  %v1451_v32 = vadd.f32 %v1450_v46, %v1338_v50  ;;  %v1340_v23 = vadd.f32 %v1339_v36, %v1227_v28  ;;  %v1522_v17 = vmul.f32 0.2, %v1449_v26  ;;  %vm1490_vm12 = vcmp.ge.f32.partialorder %v1449_v26, 0.0  ;;  %p2605_p5 = scmp.ne.s32.totalorder %s2095_s5, %s2604_s18  ;;  %s2608_s19 = scalar_lea.vmem %s2095_s5, 32 }
 0x18a   :  { %v1343_v19 = vpop.f32.mrf.mxu0  ;;  %1863 = vmatprep.mubr.bf16.mxu0 %v1572_v57  ;;  %v1553_v27 = vsel %vm1489_vm10, %v1447_v60, %v1521_v3  ;;  %v2027_v9 = vunpack.c.l.s4 %v2632_v14  ;;  %v3348_v16 = vrot.slane %v1609_v15, %v214_v1  ;;  %v2025_v46 = vcombine.high %v3353_v7, %v3353_v7  ;;  %p2610_p7 = scmp.lt.s32.totalorder %s2608_s19, %s2604_s18 }
 0x18b   :  { %v1456_v20 = vpop.f32.mrf.mxu1  ;;  %vm1491_vm9 = vcmp.ge.f32.partialorder %v1451_v32, 0.0  ;;  %v1523_v61 = vmul.f32 0.2, %v1451_v32  ;;  %v1453_v0 = vadd.f32 %v1452_v8, %v1340_v23  ;;  %v1344_v41 = vadd.f32 %v1343_v19, %v3267_v13  ;;  %1864 = vmatmul.mubr.bf16.gmra.mxu0 %v1571_v31 }
 0x18c   :  { %v1345_v11 = vpop.f32.mrf.mxu0  ;;  %v1554_v59 = vsel %vm1490_vm12, %v1449_v26, %v1522_v17  ;;  %v2028_v60 = vunpack.c.0.s8 %v2027_v9  ;;  %p2611_p8 = por %p2610_p7, %p2609_p6 }
 0x18d   :  { %v1458_v43 = vpop.f32.mrf.mxu1  ;;  %vm1492_vm11 = vcmp.ge.f32.partialorder %v1453_v0, 0.0  ;;  %v1524_v47 = vmul.f32 0.2, %v1453_v0  ;;  %v1457_v37 = vadd.f32 %v1456_v20, %v1344_v41  ;;  %v1346_v4 = vadd.f32 %v1345_v11, %v3270_v25 }
 0x18e   :  { %v1347_v29 = vpop.f32.mrf.mxu0  ;;  %v1555_v52 = vsel %vm1491_vm9, %v1451_v32, %v1523_v61  ;;  %v3359_v28 = vsub.s32 %v2028_v60, %v3159_v62  ;;  %v2007_v32 = vld [vmem:[#allocation2] sm:$0x1]  ;;  %p2612_p9 = pnand %p2611_p8, %p2605_p5 }
 0x18f   :  { %v1460_v48 = vpop.f32.mrf.mxu1  ;;  %v1459_v55 = vadd.f32 %v1458_v43, %v1346_v4  ;;  %v1348_v13 = vadd.f32 %v1347_v29, %v3277_v34  ;;  %v1556_v56 = vsel %vm1492_vm11, %v1453_v0, %v1524_v47  ;;  %v1573_v30 = vpack.c.bf16 %v1555_v52, %v1553_v27  ;;  %2010 = vperm.xlu0 %2304, %v2007_v32  }
 0x190   :  { %v1349_v2 = vpop.f32.mrf.mxu0  ;;  %v1525_v5 = vmul.f32 0.2, %v1457_v37  ;;  %vm1493_vm13 = vcmp.ge.f32.partialorder %v1457_v37, 0.0  ;;  %v1574_v44 = vpack.c.bf16 %v1556_v56, %v1554_v59  ;;  %v2039_v8 = vrot.slane %v2025_v46, %v3359_v28 }
 0x191   :  { %v1461_v24 = vadd.f32 %v1460_v48, %v1348_v13  ;;  %v1350_v58 = vadd.f32 %v1349_v2, %v1237_v38  ;;  %v1462_v25 = vpop.f32.mrf.mxu1  ;;  %v1526_v35 = vmul.f32 0.2, %v1459_v55  ;;  %vm1494_vm15 = vcmp.ge.f32.partialorder %v1459_v55, 0.0 }
 0x192   :  { %1873 = vmatprep.mubr.bf16.mxu0 %v1574_v44  ;;  %v1557_v34 = vsel %vm1493_vm13, %v1457_v37, %v1525_v5  ;;  %2074 = vmatprep.mubr.bf16.mxu1 %v2039_v8 }
 0x193   :  { %vm1495_vm14 = vcmp.ge.f32.partialorder %v1461_v24, 0.0  ;;  %v1527_v49 = vmul.f32 0.2, %v1461_v24  ;;  %v1463_v6 = vadd.f32 %v1462_v25, %v1350_v58  ;;  %1874 = vmatmul.mubr.bf16.gmra.mxu0 %v1573_v30  ;;  %v1558_v51 = vsel %vm1494_vm15, %v1459_v55, %v1526_v35 }
 0x195   :  { %vm1496_vm0 = vcmp.ge.f32.partialorder %v1463_v6, 0.0  ;;  %v1528_v33 = vmul.f32 0.2, %v1463_v6  ;;  %v1559_v42 = vsel %vm1495_vm14, %v1461_v24, %v1527_v49 }
 0x196   :  { %v1575_v21 = vpack.c.bf16 %v1559_v42, %v1557_v34 }
 0x197   :  { %v1560_v39 = vsel %vm1496_vm0, %v1463_v6, %v1528_v33 }
 0x198   :  { %v1576_v40 = vpack.c.bf16 %v1560_v39, %v1558_v51 }
 0x19a   :  { %1883 = vmatprep.mubr.bf16.mxu0 %v1576_v40 }
 0x19b   :  { %1884 = vmatmul.mubr.bf16.gmra.mxu0 %v1575_v21 }
 0x223   :  { %v1815_v45 = vpop.f32.mrf.mxu0 }
 0x224   :  { %v1816_v53 = vadd.f32 %v1815_v45, %v3344_v10 }
 0x225   :  { %v1817_v50 = vpop.f32.mrf.mxu0 }
 0x226   :  { %v1818_v22 = vadd.f32 %v1817_v50, %v3348_v16  ;;  %v1926_v26 = vmul.f32 0.2, %v1816_v53  ;;  %vm1894_vm1 = vcmp.ge.f32.partialorder %v1816_v53, 0.0 }
 0x227   :  { %v1819_v36 = vpop.f32.mrf.mxu0 }
 0x228   :  { %v1820_v12 = vadd.f32 %v1819_v36, %v3344_v10  ;;  %v1927_v23 = vmul.f32 0.2, %v1818_v22  ;;  %v3367_v18 = vsel %vm1894_vm1, %v1816_v53, %v1926_v26  ;;  %vm1895_vm3 = vcmp.ge.f32.partialorder %v1818_v22, 0.0 }
 0x229   :  { %v1821_v31 = vpop.f32.mrf.mxu0 }
 0x22a   :  { %vm1896_vm2 = vcmp.ge.f32.partialorder %v1820_v12, 0.0  ;;  %v1928_v62 = vmul.f32 0.2, %v1820_v12  ;;  %v1822_v54 = vadd.f32 %v1821_v31, %v3348_v16  ;;  %v3375_v17 = vsel %vm1895_vm3, %v1818_v22, %v1927_v23 }
 0x22b   :  { %v1825_v3 = vpop.f32.mrf.mxu0 }
 0x22c   :  { %v3369_v19 = vsel %vm1896_vm2, %v1820_v12, %v1928_v62  ;;  %vm1897_vm4 = vcmp.ge.f32.partialorder %v1822_v54, 0.0  ;;  %v1929_v20 = vmul.f32 0.2, %v1822_v54  ;;  %v1826_v57 = vadd.f32 %v1825_v3, %v3344_v10 }
 0x22d   :  { %v1827_v0 = vpop.f32.mrf.mxu0 }
 0x22e   :  { %v1828_v41 = vadd.f32 %v1827_v0, %v3348_v16  ;;  %v3377_v11 = vsel %vm1897_vm4, %v1822_v54, %v1929_v20  ;;  %v1930_v43 = vmul.f32 0.2, %v1826_v57  ;;  %vm1898_vm5 = vcmp.ge.f32.partialorder %v1826_v57, 0.0 }
 0x22f   :  { %v1829_v47 = vpop.f32.mrf.mxu0  ;;  %v1992_v37 = vpack.c.bf16 %v3377_v11, %v3375_v17 }
 0x230   :  { %v1830_v4 = vadd.f32 %v1829_v47, %v3344_v10  ;;  %v1931_v48 = vmul.f32 0.2, %v1828_v41  ;;  %v3383_v55 = vsel %vm1898_vm5, %v1826_v57, %v1930_v43  ;;  %vm1899_vm7 = vcmp.ge.f32.partialorder %v1828_v41, 0.0 }
 0x231   :  { %v1831_v29 = vpop.f32.mrf.mxu0 }
 0x232   :  { %vm1900_vm6 = vcmp.ge.f32.partialorder %v1830_v4, 0.0  ;;  %v1932_v52 = vmul.f32 0.2, %v1830_v4  ;;  %v1832_v38 = vadd.f32 %v1831_v29, %v3348_v16  ;;  %v3391_v58 = vsel %vm1899_vm7, %v1828_v41, %v1931_v48 }
 0x233   :  { %v1835_v13 = vpop.f32.mrf.mxu0 }
 0x234   :  { %v3385_v27 = vsel %vm1900_vm6, %v1830_v4, %v1932_v52  ;;  %vm1901_vm8 = vcmp.ge.f32.partialorder %v1832_v38, 0.0  ;;  %v1933_v2 = vmul.f32 0.2, %v1832_v38  ;;  %v1836_v56 = vadd.f32 %v1835_v13, %v3344_v10 }
 0x235   :  { %v1993_v30 = vpack.c.bf16 %v3385_v27, %v3383_v55  ;;  %v1837_v5 = vpop.f32.mrf.mxu0 }
 0x236   :  { %v1838_v24 = vadd.f32 %v1837_v5, %v3348_v16  ;;  %v3393_v59 = vsel %vm1901_vm8, %v1832_v38, %v1933_v2  ;;  %v1934_v25 = vmul.f32 0.2, %v1836_v56  ;;  %vm1902_vm9 = vcmp.ge.f32.partialorder %v1836_v56, 0.0 }
 0x237   :  { %v1839_v44 = vpop.f32.mrf.mxu0  ;;  %v1994_v35 = vpack.c.bf16 %v3393_v59, %v3391_v58 }
 0x238   :  { %v1840_v49 = vadd.f32 %v1839_v44, %v3344_v10  ;;  %v1935_v33 = vmul.f32 0.2, %v1838_v24  ;;  %v3399_v21 = vsel %vm1902_vm9, %v1836_v56, %v1934_v25  ;;  %vm1903_vm11 = vcmp.ge.f32.partialorder %v1838_v24, 0.0 }
 0x239   :  { %v1841_v6 = vpop.f32.mrf.mxu0 }
 0x23a   :  { %vm1904_vm10 = vcmp.ge.f32.partialorder %v1840_v49, 0.0  ;;  %v1936_v34 = vmul.f32 0.2, %v1840_v49  ;;  %v1842_v42 = vadd.f32 %v1841_v6, %v3348_v16  ;;  %v3408_v60 = vsel %vm1903_vm11, %v1838_v24, %v1935_v33 }
 0x23b   :  { %v1845_v51 = vpop.f32.mrf.mxu0 }
 0x23c   :  { %v3401_v39 = vsel %vm1904_vm10, %v1840_v49, %v1936_v34  ;;  %vm1905_vm12 = vcmp.ge.f32.partialorder %v1842_v42, 0.0  ;;  %v1937_v40 = vmul.f32 0.2, %v1842_v42  ;;  %v1846_v15 = vadd.f32 %v1845_v51, %v3344_v10 }
 0x23d   :  { %v1995_v14 = vpack.c.bf16 %v3401_v39, %v3399_v21  ;;  %v3406_v9 = vpop.f32.mrf.mxu0  ;;  %v3489_v21 = vrot.slane %v3353_v7, %v3359_v28  ;;  %v2011_v39 = vpop.permute.xlu0 %2010 }
 0x23e   :  { %v3410_v45 = vsel %vm1905_vm12, %v1842_v42, %v1937_v40  ;;  %v1938_v50 = vmul.f32 0.2, %v1846_v15  ;;  %vm1906_vm13 = vcmp.ge.f32.partialorder %v1846_v15, 0.0  ;;  %v2016_v58 = vrot.slane %v2011_v39, %v3162_v63 }
 0x23f   :  { %v1849_v46 = vpop.f32.mrf.mxu0  ;;  %v1996_v53 = vpack.c.bf16 %v3410_v45, %v3408_v60 }
 0x240   :  { %v1850_v22 = vadd.f32 %v1849_v46, %v3344_v10  ;;  %v3419_v12 = vsel %vm1906_vm13, %v1846_v15, %v1938_v50 }
 0x241   :  { %v3415_v26 = vpop.f32.mrf.mxu0 }
 0x242   :  { %vm1908_vm14 = vcmp.ge.f32.partialorder %v1850_v22, 0.0  ;;  %v1940_v36 = vmul.f32 0.2, %v1850_v22 }
 0x243   :  { %v3417_v8 = vpop.f32.mrf.mxu0 }
 0x244   :  { %v3421_v31 = vsel %vm1908_vm14, %v1850_v22, %v1940_v36 }
 0x245   :  { %v1997_v32 = vpack.c.bf16 %v3421_v31, %v3419_v12  ;;  %v3425_v23 = vpop.f32.mrf.mxu0 }
 0x247   :  { %v3427_v62 = vpop.f32.mrf.mxu0 }
 0x249   :  { %v1861_v54 = vpop.f32.mrf.mxu0 }
 0x24b   :  { %v1865_v3 = vpop.f32.mrf.mxu0 }
 0x24d   :  { %v1867_v20 = vpop.f32.mrf.mxu0 }
 0x24f   :  { %v1869_v57 = vpop.f32.mrf.mxu0 }
 0x251   :  { %v1871_v0 = vpop.f32.mrf.mxu0 }
 0x252   :  { %v1872_v15 = vadd.f32 %v1871_v0, %v3348_v16 }
 0x253   :  { %v1875_v41 = vpop.f32.mrf.mxu0 }
 0x254   :  { %v1876_v36 = vadd.f32 %v1875_v41, %v3344_v10  ;;  %v1949_v61 = vmul.f32 0.2, %v1872_v15  ;;  %vm1917_vm6 = vcmp.ge.f32.partialorder %v1872_v15, 0.0  ;;  %v1870_v41 = vadd.f32 %v1869_v57, %v3344_v10 }
 0x255   :  { %v1877_v43 = vpop.f32.mrf.mxu0 }
 0x256   :  { %v1878_v56 = vadd.f32 %v1877_v43, %v3348_v16  ;;  %vm1918_vm7 = vcmp.ge.f32.partialorder %v1876_v36, 0.0  ;;  %vm1916_vm9 = vcmp.ge.f32.partialorder %v1870_v41, 0.0 }
 0x257   :  { %v1879_v47 = vpop.f32.mrf.mxu0 }
 0x258   :  { %v1951_v34 = vmul.f32 0.2, %v1878_v56  ;;  %vm1919_vm4 = vcmp.ge.f32.partialorder %v1878_v56, 0.0  ;;  %v1880_v51 = vadd.f32 %v1879_v47, %v3344_v10  ;;  %v1950_v47 = vmul.f32 0.2, %v1876_v36 }
 0x259   :  { %v1881_v4 = vpop.f32.mrf.mxu0 }
 0x25a   :  { %v1882_v48 = vadd.f32 %v1881_v4, %v3348_v16  ;;  %vm1920_vm5 = vcmp.ge.f32.partialorder %v1880_v51, 0.0 }
 0x25b   :  { %v1885_v29 = vpop.f32.mrf.mxu0 }
 0x25c   :  { %v1886_v13 = vadd.f32 %v1885_v29, %v3344_v10  ;;  %v1953_v24 = vmul.f32 0.2, %v1882_v48  ;;  %vm1921_vm0 = vcmp.ge.f32.partialorder %v1882_v48, 0.0  ;;  %v1868_v29 = vadd.f32 %v1867_v20, %v3348_v16 }
 0x25d   :  { %v1887_v52 = vpop.f32.mrf.mxu0  ;;  %v1981_v20 = vsel %vm1917_vm6, %v1872_v15, %v1949_v61  ;;  %v1860_v61 = vadd.f32 %v3427_v62, %v3344_v10 }
 0x25e   :  { %v1888_v38 = vadd.f32 %v1887_v52, %v3348_v16  ;;  %v1954_v33 = vmul.f32 0.2, %v1886_v13  ;;  %vm1922_vm2 = vcmp.ge.f32.partialorder %v1886_v13, 0.0  ;;  %v1985_v22 = vsel %vm1921_vm0, %v1882_v48, %v1953_v24 }
 0x25f   :  { %v1889_v2 = vpop.f32.mrf.mxu0  ;;  %v1947_v0 = vmul.f32 0.2, %v1868_v29  ;;  %vm1915_vm8 = vcmp.ge.f32.partialorder %v1868_v29, 0.0  ;;  %vm1912_vm13 = vcmp.ge.f32.partialorder %v1860_v61, 0.0 }
 0x260   :  { %v1890_v5 = vadd.f32 %v1889_v2, %v3344_v10  ;;  %v1955_v44 = vmul.f32 0.2, %v1888_v38  ;;  %vm1923_vm1 = vcmp.ge.f32.partialorder %v1888_v38, 0.0  ;;  %v1986_v43 = vsel %vm1922_vm2, %v1886_v13, %v1954_v33 }
 0x261   :  { %v1891_v25 = vpop.f32.mrf.mxu0  ;;  %v1983_v2 = vsel %vm1919_vm4, %v1878_v56, %v1951_v34  ;;  %v1866_v13 = vadd.f32 %v1865_v3, %v3344_v10  ;;  %v1982_v56 = vsel %vm1918_vm7, %v1876_v36, %v1950_v47  ;;  %v1856_v34 = vadd.f32 %v3417_v8, %v3344_v10 }
 0x262   :  { %vm1924_vm15 = vcmp.ge.f32.partialorder %v1890_v5, 0.0  ;;  %v1956_v49 = vmul.f32 0.2, %v1890_v5  ;;  %v1892_v6 = vadd.f32 %v1891_v25, %v3348_v16  ;;  %v1987_v46 = vsel %vm1923_vm1, %v1888_v38, %v1955_v44 }
 0x263   :  { %v1952_v25 = vmul.f32 0.2, %v1880_v51  ;;  %v2004_v1 = vpack.c.bf16 %v1985_v22, %v1983_v2  ;;  %v1862_v38 = vadd.f32 %v1861_v54, %v3348_v16  ;;  %v1979_v44 = vsel %vm1915_vm8, %v1868_v29, %v1947_v0 }
 0x264   :  { %vm1925_vm3 = vcmp.ge.f32.partialorder %v1892_v6, 0.0  ;;  %v1957_v42 = vmul.f32 0.2, %v1892_v6  ;;  %v1988_v40 = vsel %vm1924_vm15, %v1890_v5, %v1956_v49  ;;  %v1858_v5 = vadd.f32 %v3425_v23, %v3348_v16 }
 0x265   :  { %v2005_v52 = vpack.c.bf16 %v1988_v40, %v1986_v43  ;;  %v1984_v48 = vsel %vm1920_vm5, %v1880_v51, %v1952_v25  ;;  %v1948_v49 = vmul.f32 0.2, %v1870_v41  ;;  %vm1913_vm10 = vcmp.ge.f32.partialorder %v1862_v38, 0.0 }
 0x266   :  { %v1989_v50 = vsel %vm1925_vm3, %v1892_v6, %v1957_v42  ;;  %v2003_v24 = vpack.c.bf16 %v1984_v48, %v1982_v56  ;;  %v2002_v6 = vpack.c.bf16 %v1981_v20, %v1979_v44  ;;  %v1946_v33 = vmul.f32 0.2, %v1866_v13 }
 0x267   :  { %v2006_v4 = vpack.c.bf16 %v1989_v50, %v1987_v46  ;;  %v1943_v57 = vmul.f32 0.2, %v1858_v5  ;;  %vm1914_vm11 = vcmp.ge.f32.partialorder %v1866_v13, 0.0  ;;  %vm1911_vm12 = vcmp.ge.f32.partialorder %v1858_v5, 0.0 }
 0x268   :  { %v1980_v54 = vsel %vm1916_vm9, %v1870_v41, %v1948_v49  ;;  %v1852_v23 = vadd.f32 %v3415_v26, %v3348_v16  ;;  %v1978_v42 = vsel %vm1914_vm11, %v1866_v13, %v1946_v33  ;;  %v1848_v51 = vadd.f32 %v3406_v9, %v3348_v16 }
 0x269   :  { %2042 = vmatprep.subr.bf16.mxu1 %v2006_v4  ;;  %v2001_v40 = vpack.c.bf16 %v1980_v54, %v1978_v42  ;;  %v1975_v15 = vsel %vm1911_vm12, %v1858_v5, %v1943_v57  ;;  %v1944_v46 = vmul.f32 0.2, %v1860_v61  ;;  %v1942_v62 = vmul.f32 0.2, %v1856_v34 }
 0x26a   :  { %2043 = vmatpush1.bf16.xpose.msra.mxu1 %v2005_v52  ;;  %v1941_v22 = vmul.f32 0.2, %v1852_v23  ;;  %vm1909_vm14 = vcmp.ge.f32.partialorder %v1852_v23, 0.0  ;;  %v1939_v36 = vmul.f32 0.2, %v1848_v51  ;;  %vm1910_vm15 = vcmp.ge.f32.partialorder %v1856_v34, 0.0 }
 0x26b   :  { %2044 = vmatprep.subr.bf16.mxu1 %v2004_v1  ;;  %v1945_v1 = vmul.f32 0.2, %v1862_v38  ;;  %vm1907_vm0 = vcmp.ge.f32.partialorder %v1848_v51, 0.0  ;;  %v1976_v26 = vsel %vm1912_vm13, %v1860_v61, %v1944_v46  ;;  %v1974_v10 = vsel %vm1910_vm15, %v1856_v34, %v1942_v62 }
 0x26c   :  { %v1973_v43 = vsel %vm1909_vm14, %v1852_v23, %v1941_v22  ;;  %v1999_v8 = vpack.c.bf16 %v1976_v26, %v1974_v10  ;;  %v1971_v4 = vsel %vm1907_vm0, %v1848_v51, %v1939_v36  ;;  %v3488_v16 = vpack.c.bf16 %v3369_v19, %v3367_v18 }
 0x26d   :  { %v1977_v3 = vsel %vm1913_vm10, %v1862_v38, %v1945_v1  ;;  %v1998_v29 = vpack.c.bf16 %v1973_v43, %v1971_v4 }
 0x26e   :  { %v2000_v50 = vpack.c.bf16 %v1977_v3, %v1975_v15 }
 0x272   :  { %2045 = vmatpush1.bf16.xpose.msra.mxu1 %v2003_v24 }
 0x273   :  { %2046 = vmatprep.subr.bf16.mxu1 %v2002_v6 }
 0x27a   :  { %2047 = vmatpush1.bf16.xpose.msra.mxu1 %v2001_v40 }
 0x27b   :  { %2048 = vmatprep.subr.bf16.mxu1 %v2000_v50 }
 0x282   :  { %2049 = vmatpush1.bf16.xpose.msra.mxu1 %v1999_v8 }
 0x283   :  { %2050 = vmatprep.subr.bf16.mxu1 %v1998_v29 }
 0x28a   :  { %2051 = vmatpush1.bf16.xpose.msra.mxu1 %v1997_v32 }
 0x28b   :  { %2052 = vmatprep.subr.bf16.mxu1 %v1996_v53 }
 0x292   :  { %2053 = vmatpush1.bf16.xpose.msra.mxu1 %v1995_v14 }
 0x293   :  { %2054 = vmatprep.subr.bf16.mxu1 %v1994_v35 }
 0x29a   :  { %2055 = vmatpush1.bf16.xpose.msra.mxu1 %v1993_v30 }
 0x29b   :  { %2056 = vmatprep.subr.bf16.mxu1 %v1992_v37 }
 0x2a2   :  { %2057 = vmatpush1.bf16.xpose.msra.mxu1 %v3488_v16 }
 0x2a9   :  { %2075 = vmatmul.mubr.bf16.vlgmr.msra.gmra.mxu1 %v3489_v21 }
 0x369   :  { %v2076_v59 = vpop.f32.mrf.mxu1 }
 0x36a   :  { %v2077_v35 = vadd.f32 %v2076_v59, %v2016_v58 }
 0x36b   :  { %v2078_v14 = vpop.f32.mrf.mxu1 }
 0x36c   :  { %v2082_v55 = vsub.f32 0.0, %v2077_v35 }
 0x36d   :  { %v2079_v27 = vpop.f32.mrf.mxu1 }
 0x36e   :  { %v2083_v30 = vmul.f32 1.442695, %v2082_v55 }
 0x36f   :  { %v2080_v9 = vpop.f32.mrf.mxu1 }
 0x370   :  { %2580 = vpow2.f32 %v2083_v30 }
 0x37d   :  { %v2581_v17 = vpop.eup %2580 }
 0x37e   :  { %v2085_v11 = vadd.f32 1.0, %v2581_v17 }
 0x380   :  { %2582 = vrcp.f32 %v2085_v11 }
 0x38d   :  { %v2583_v18 = vpop.eup %2582 }
 0x38e   :  { %2087 = vst [vmem:[#allocation6] sm:$0x1] %v2583_v18 }
 0x38f   :  { %2615 = shalt.err (!%p2612_p9)
}
 0x390   :  { %2097 = dma.vmem_to_hbm [thread:$0]  %s2095_s5, 16, %s3487_s7, [#allocation5]  }
 0x391   :  { %2626 = dma.done.wait [#allocation5], 16  }
 0x392   :  { %2627 = vsyncadd [#allocation5], 4294967280 }
 0x393   :  { %2101 = vsyncpa [#allocation4], 1 }
 0x394   :  { %2102 = vsyncpa [#allocation5], 1 }

</bundles_post_ra>
